<compile_context>
chip_gen: v7x
topology: tpu7x:2x2x1
jax: 0.10.0
libtpu: 0.0.40
codegen_flags: <defaults>
</compile_context>

<pallas_src>
import functools

import jax
import jax.numpy as jnp
from jax.experimental import pallas as pl
from jax.experimental.pallas import tpu as pltpu


# Row indices of the packed per-layer small-vector array (shape (_NVEC, D)).
_BO, _LN1W, _LN1B, _B2, _LN2W, _LN2B = range(6)
_NVEC = 8  # padded to a full 8-sublane tile


# ----------------------------- helpers --------------------------------------


def _mm(a, b):
    """a @ b on the MXU with bf16 operands and f32 accumulation."""
    return jax.lax.dot_general(
        a.astype(jnp.bfloat16), b.astype(jnp.bfloat16),
        (((1,), (0,)), ((), ())),
        preferred_element_type=jnp.float32)


def _mm_t(a, b):
    """a @ b.T (contract last dims) on the MXU with bf16 operands, f32 accumulation."""
    return jax.lax.dot_general(
        a.astype(jnp.bfloat16), b.astype(jnp.bfloat16),
        (((1,), (1,)), ((), ())),
        preferred_element_type=jnp.float32)


def _layernorm(x, gamma, beta, eps=1e-5):
    mu = jnp.mean(x, axis=-1, keepdims=True)
    xc = x - mu
    var = jnp.mean(xc * xc, axis=-1, keepdims=True)
    return xc * jax.lax.rsqrt(var + eps) * gamma + beta


@functools.lru_cache(maxsize=None)
def _vmem_limit_bytes():
    """Generation-aware VMEM budget: ~3/4 of physical (96 MiB v5e/v6e, 48 MiB v7x)."""
    try:
        cap = int(pltpu.get_tpu_info().vmem_capacity_bytes)
    except Exception:
        cap = 64 * 1024 * 1024
    return max(32 * 1024 * 1024, min((cap * 3) // 4, 100 * 1024 * 1024))


# ----------------------------- kernels --------------------------------------


def _stack_kernel(
    x_ref,       # (S, D)        f32  embedded tokens for this batch element
    wqkv_ref,    # (3H, D, Dh)   bf16 per-head [q heads | k heads | v heads]
    bqkv_ref,    # (3H, Dh)      f32  per-head q/k/v biases
    wo_ref,      # (H, Dh, D)    bf16 out-proj rows grouped per head
    w1_ref,      # (D, F)        bf16
    b1_ref,      # (1, F)        f32
    w2_ref,      # (F, D)        bf16
    vec_ref,     # (8, D)        f32  rows [bo, ln1w, ln1b, b2, ln2w, ln2b, 0, 0]
    o_ref,       # (S, D)        f32  final activations (written at last layer)
    act_ref,     # (S, D)        f32  persistent activation carry across layers
    *, num_heads, num_layers,
):
    l = pl.program_id(1)
    H = num_heads
    S, D = act_ref.shape
    Dh = D // H
    scale = 1.0 / (Dh ** 0.5)

    # Layer 0 of each batch element: load activations from the embedded input.
    @pl.when(l == 0)
    def _():
        act_ref[...] = x_ref[...]

    x = act_ref[...]                        # (S, D) f32
    vec = vec_ref[...]                      # (8, D) f32

    # Causal additive bias, generated in-kernel (no HBM traffic, hides under MXU slack).
    row = jax.lax.broadcasted_iota(jnp.int32, (S, S), 0)
    col = jax.lax.broadcasted_iota(jnp.int32, (S, S), 1)
    mask = jnp.where(col <= row, jnp.float32(0.0), jnp.float32(-1e30))

    x_bf = x.astype(jnp.bfloat16)

    # ---- Multi-head self-attention: per-head projections, merge folded into Wo ----
    attn = jnp.zeros((S, D), jnp.float32)
    for h in range(H):                      # static unroll; no lane-axis head slicing
        q = ((_mm(x_bf, wqkv_ref[h]) + bqkv_ref[h:h + 1, :]) * scale
             ).astype(jnp.bfloat16)                               # (S, Dh)
        k = (_mm(x_bf, wqkv_ref[H + h]) + bqkv_ref[H + h:H + h + 1, :]
             ).astype(jnp.bfloat16)                               # (S, Dh)
        v = (_mm(x_bf, wqkv_ref[2 * H + h]) + bqkv_ref[2 * H + h:2 * H + h + 1, :]
             ).astype(jnp.bfloat16)                               # (S, Dh)

        s = _mm_t(q, k) + mask                                    # (S, S) f32
        s = s - jnp.max(s, axis=-1, keepdims=True)
        e = jnp.exp(s)
        p = (e * pl.reciprocal(jnp.sum(e, axis=-1, keepdims=True), approx=True)
             ).astype(jnp.bfloat16)
        ctx = _mm(p, v)                                           # (S, Dh) f32
        # Head merge folded into the out-projection: sum_h ctx_h @ Wo_h.
        attn = attn + _mm(ctx, wo_ref[h])                         # (S, D) f32

    attn = attn + vec[_BO:_BO + 1]

    # ---- Post-LN residual block 1 ----------------------------------------------
    x1 = _layernorm(x + attn, vec[_LN1W:_LN1W + 1], vec[_LN1B:_LN1B + 1])

    # ---- Feed-forward: relu(x1 @ W1 + b1) @ W2 + b2 (hidden kept bf16) ----------
    hdn = jnp.maximum(_mm(x1, w1_ref[...]) + b1_ref[...], 0.0).astype(jnp.bfloat16)
    ff = _mm(hdn, w2_ref[...]) + vec[_B2:_B2 + 1]

    # ---- Post-LN residual block 2 -----------------------------------------------
    out = _layernorm(x1 + ff, vec[_LN2W:_LN2W + 1], vec[_LN2B:_LN2B + 1])

    act_ref[...] = out                      # carry to the next layer

    @pl.when(l == num_layers - 1)
    def _():
        o_ref[...] = out


def _output_linear_kernel(x_ref, w_ref, b_ref, o_ref):
    # (tm, D) x (D, Vp) with Vp a multiple of 128 -> lane-dense stores.
    o_ref[...] = _mm(x_ref[...], w_ref[...]) + b_ref[...]


# ----------------------------- wrappers -------------------------------------


def encoder_stack(x, params, *, num_heads):
    """x: (B, S, D) f32 -> (B, S, D) f32.  All transformer layers in one pallas_call."""
    B, S, D = x.shape
    L = params["wqkv"].shape[0]
    F = params["w1"].shape[-1]
    H = num_heads
    Dh = D // H

    kernel = functools.partial(_stack_kernel, num_heads=H, num_layers=L)
    in_specs = [
        pl.BlockSpec((None, S, D), lambda b, l: (b, 0, 0)),            # x (per batch)
        pl.BlockSpec((None, 3 * H, D, Dh), lambda b, l: (l, 0, 0, 0)),  # wqkv (per layer)
        pl.BlockSpec((None, 3 * H, Dh), lambda b, l: (l, 0, 0)),        # bqkv
        pl.BlockSpec((None, H, Dh, D), lambda b, l: (l, 0, 0, 0)),      # wo
        pl.BlockSpec((None, D, F), lambda b, l: (l, 0, 0)),             # w1
        pl.BlockSpec((None, 1, F), lambda b, l: (l, 0, 0)),             # b1
        pl.BlockSpec((None, F, D), lambda b, l: (l, 0, 0)),             # w2
        pl.BlockSpec((None, _NVEC, D), lambda b, l: (l, 0, 0)),         # vecs
    ]
    out_spec = pl.BlockSpec((None, S, D), lambda b, l: (b, 0, 0))

    return pl.pallas_call(
        kernel,
        out_shape=jax.ShapeDtypeStruct((B, S, D), jnp.float32),
        grid=(B, L),                        # batch outer (parallel), layers inner (carry)
        in_specs=in_specs,
        out_specs=out_spec,
        scratch_shapes=[pltpu.VMEM((S, D), jnp.float32)],
        compiler_params=pltpu.CompilerParams(
            dimension_semantics=("parallel", "arbitrary"),
            vmem_limit_bytes=_vmem_limit_bytes()),
    )(x, params["wqkv"], params["bqkv"], params["wo"],
      params["w1"], params["b1"], params["w2"], params["vecs"])


def output_linear(x2d, w_p, b_p):
    """x2d: (M, D) -> (M, Vp) logits (Vp pre-padded to a 128 multiple at init)."""
    M, D = x2d.shape
    Vp = w_p.shape[1]
    tm = 8 if M % 8 == 0 else M
    return pl.pallas_call(
        _output_linear_kernel,
        out_shape=jax.ShapeDtypeStruct((M, Vp), jnp.float32),
        grid=(M // tm,),
        in_specs=[pl.BlockSpec((tm, D), lambda i: (i, 0)),
                  pl.BlockSpec((D, Vp), lambda i: (0, 0)),
                  pl.BlockSpec((1, Vp), lambda i: (0, 0))],
        out_specs=pl.BlockSpec((tm, Vp), lambda i: (i, 0)),
        compiler_params=pltpu.CompilerParams(
            dimension_semantics=("parallel",),
            vmem_limit_bytes=_vmem_limit_bytes()),
    )(x2d, w_p, b_p)


def char_transformer_forward(tokens, params, num_heads):
    """tokens: (B, S) int32 -> logits (B, S, vocab_size)."""
    B, S = tokens.shape
    V, D = params["embed"].shape

    # Embedding lookup (gather stays in plain JAX).
    h = params["embed"][tokens].astype(jnp.float32)                 # (B, S, D)

    h = encoder_stack(h, params, num_heads=num_heads)               # (B, S, D)

    logits = output_linear(h.reshape(B * S, D), params["w_out_p"], params["b_out_p"])
    return logits[:, :V].reshape(B, S, V)


# ----------------------------- param init -----------------------------------
# Layout convention: y = x @ W + b.  When loading a real PyTorch checkpoint,
# in_proj/out_proj/linear weights must be transposed and regrouped per head.


def init_params(key, vocab_size, embed_dim, num_heads, num_layers, dim_ff=2048):
    scale = 0.02
    D, F, H, L = embed_dim, dim_ff, num_heads, num_layers
    Dh = D // H

    def nrm(k, shape, dtype=jnp.float32):
        return (scale * jax.random.normal(k, shape)).astype(dtype)

    keys = jax.random.split(key, 2 + L)

    # Output Linear pre-padded to a lane-dense (128-multiple) vocab at init time.
    Vp = max(128, ((vocab_size + 127) // 128) * 128)
    w_out = nrm(keys[1], (D, vocab_size), jnp.bfloat16)
    w_out_p = jnp.zeros((D, Vp), jnp.bfloat16).at[:, :vocab_size].set(w_out)
    b_out_p = jnp.zeros((1, Vp), jnp.float32)

    wqkv_l, bqkv_l, wo_l, w1_l, b1_l, w2_l, vec_l = [], [], [], [], [], [], []
    for l in range(L):
        lk = jax.random.split(keys[2 + l], 4)
        # Per-head grouping: rows 0..H-1 -> Wq heads, H..2H-1 -> Wk heads, 2H..3H-1 -> Wv.
        wqkv_l.append(nrm(lk[0], (3 * H, D, Dh), jnp.bfloat16))
        bqkv_l.append(jnp.zeros((3 * H, Dh), jnp.float32))
        wo_l.append(nrm(lk[1], (H, Dh, D), jnp.bfloat16))     # out-proj rows per head
        w1_l.append(nrm(lk[2], (D, F), jnp.bfloat16))
        b1_l.append(jnp.zeros((1, F), jnp.float32))
        w2_l.append(nrm(lk[3], (F, D), jnp.bfloat16))
        vec = jnp.zeros((_NVEC, D), jnp.float32).at[_LN1W].set(1.0).at[_LN2W].set(1.0)
        vec_l.append(vec)

    return {
        "embed": nrm(keys[0], (vocab_size, D)),
        "w_out_p": w_out_p,
        "b_out_p": b_out_p,
        "wqkv": jnp.stack(wqkv_l),   # (L, 3H, D, Dh)
        "bqkv": jnp.stack(bqkv_l),   # (L, 3H, Dh)
        "wo":   jnp.stack(wo_l),     # (L, H, Dh, D)
        "w1":   jnp.stack(w1_l),     # (L, D, F)
        "b1":   jnp.stack(b1_l),     # (L, 1, F)
        "w2":   jnp.stack(w2_l),     # (L, F, D)
        "vecs": jnp.stack(vec_l),    # (L, 8, D)
    }


# ----------------------------- main ------------------------------------------


if __name__ == "__main__":
    VOCAB = 32
    EMBED = 64
    HEADS = 4
    LAYERS = 2
    BATCH = 2
    SEQ = 8

    key = jax.random.PRNGKey(0)
    k_tok, k_par = jax.random.split(key)

    tokens = jax.random.randint(k_tok, (BATCH, SEQ), 0, VOCAB, dtype=jnp.int32)
    params = init_params(k_par, VOCAB, EMBED, HEADS, LAYERS)

    fwd = jax.jit(functools.partial(char_transformer_forward, num_heads=HEADS))
    logits = jax.block_until_ready(fwd(tokens, params))

    assert logits.shape == (BATCH, SEQ, VOCAB), logits.shape
    assert logits.dtype == jnp.float32
    assert bool(jnp.all(jnp.isfinite(logits)))
    print("KERNEL_OK")
</pallas_src>

<mosaic_0001>
module attributes {stable_mosaic.version = 11 : i64} {
  func.func @_output_linear_kernel(%arg0: i32, %arg1: memref<8x64xf32, #tpu.memory_space<vmem>>, %arg2: memref<64x128xbf16, #tpu.memory_space<vmem>>, %arg3: memref<1x128xf32, #tpu.memory_space<vmem>>, %arg4: memref<8x128xf32, #tpu.memory_space<vmem>>) attributes {dimension_semantics = [#tpu.dimension_semantics<parallel>], iteration_bounds = array<i64: 2>, scalar_prefetch = 0 : i64, scratch_operands = 0 : i64, tpu.core_type = #tpu.core_type<tc>, window_params = [{transform_indices = @transform_0, window_bounds = array<i64: 8, 64>}, {pipeline_mode = #tpu.pipeline_mode<synchronous>, transform_indices = @transform_1, window_bounds = array<i64: 64, 128>}, {pipeline_mode = #tpu.pipeline_mode<synchronous>, transform_indices = @transform_2, window_bounds = array<i64: 1, 128>}, {transform_indices = @transform_3, window_bounds = array<i64: 8, 128>}]} {
    %c0 = arith.constant 0 : index
    %c0_0 = arith.constant 0 : index
    %0 = vector.load %arg1[%c0, %c0_0] : memref<8x64xf32, #tpu.memory_space<vmem>>, vector<8x64xf32>
    %c0_1 = arith.constant 0 : index
    %c0_2 = arith.constant 0 : index
    %1 = vector.load %arg2[%c0_1, %c0_2] : memref<64x128xbf16, #tpu.memory_space<vmem>>, vector<64x128xbf16>
    %2 = arith.truncf %0 : vector<8x64xf32> to vector<8x64xbf16>
    %cst = arith.constant dense<0.000000e+00> : vector<8x128xf32>
    %3 = tpu.matmul %2, %1, %cst {dimension_numbers = #tpu.dot_dimension_numbers<[1], [0], [0], [1], [0, 0, 1, 1], [], []>} : vector<8x64xbf16>, vector<64x128xbf16>, vector<8x128xf32> -> vector<8x128xf32>
    %c0_3 = arith.constant 0 : index
    %c0_4 = arith.constant 0 : index
    %4 = vector.load %arg3[%c0_3, %c0_4] : memref<1x128xf32, #tpu.memory_space<vmem>>, vector<1x128xf32>
    %5 = vector.broadcast %4 : vector<1x128xf32> to vector<8x128xf32>
    %6 = arith.addf %3, %5 : vector<8x128xf32>
    %c0_5 = arith.constant 0 : index
    %c0_6 = arith.constant 0 : index
    %7 = vector.load %arg4[%c0_5, %c0_6] : memref<8x128xf32, #tpu.memory_space<vmem>>, vector<8x128xf32>
    tpu.vector_store %arg4[%c0_5, %c0_6], %6 {strides = array<i32>} : memref<8x128xf32, #tpu.memory_space<vmem>>, vector<8x128xf32>,
    return
  }
  func.func @transform_0(%arg0: i32) -> (i32, i32) {
    %c0_i32 = arith.constant 0 : i32
    %c0_i32_0 = arith.constant 0 : i32
    return %arg0, %c0_i32 : i32, i32
  }
  func.func @transform_1(%arg0: i32) -> (i32, i32) {
    %c0_i32 = arith.constant 0 : i32
    %c0_i32_0 = arith.constant 0 : i32
    %c0_i32_1 = arith.constant 0 : i32
    return %c0_i32, %c0_i32_0 : i32, i32
  }
  func.func @transform_2(%arg0: i32) -> (i32, i32) {
    %c0_i32 = arith.constant 0 : i32
    %c0_i32_0 = arith.constant 0 : i32
    %c0_i32_1 = arith.constant 0 : i32
    return %c0_i32, %c0_i32_0 : i32, i32
  }
  func.func @transform_3(%arg0: i32) -> (i32, i32) {
    %c0_i32 = arith.constant 0 : i32
    %c0_i32_0 = arith.constant 0 : i32
    return %arg0, %c0_i32 : i32, i32
  }
}

module attributes {stable_mosaic.version = 11 : i64} {
  func.func @_stack_kernel(%arg0: i32, %arg1: i32, %arg2: memref<1x8x64xf32, #tpu.memory_space<vmem>>, %arg3: memref<1x12x64x16xbf16, #tpu.memory_space<vmem>>, %arg4: memref<1x12x16xf32, #tpu.memory_space<vmem>>, %arg5: memref<1x4x16x64xbf16, #tpu.memory_space<vmem>>, %arg6: memref<1x64x2048xbf16, #tpu.memory_space<vmem>>, %arg7: memref<1x1x2048xf32, #tpu.memory_space<vmem>>, %arg8: memref<1x2048x64xbf16, #tpu.memory_space<vmem>>, %arg9: memref<1x8x64xf32, #tpu.memory_space<vmem>>, %arg10: memref<1x8x64xf32, #tpu.memory_space<vmem>>, %arg11: memref<8x64xf32, #tpu.memory_space<vmem>>) attributes {dimension_semantics = [#tpu.dimension_semantics<parallel>, #tpu.dimension_semantics<arbitrary>], iteration_bounds = array<i64: 2, 2>, scalar_prefetch = 0 : i64, scratch_operands = 1 : i64, tpu.core_type = #tpu.core_type<tc>, window_params = [{transform_indices = @transform_0, window_bounds = array<i64: 1, 8, 64>}, {transform_indices = @transform_1, window_bounds = array<i64: 1, 12, 64, 16>}, {transform_indices = @transform_2, window_bounds = array<i64: 1, 12, 16>}, {transform_indices = @transform_3, window_bounds = array<i64: 1, 4, 16, 64>}, {transform_indices = @transform_4, window_bounds = array<i64: 1, 64, 2048>}, {transform_indices = @transform_5, window_bounds = array<i64: 1, 1, 2048>}, {transform_indices = @transform_6, window_bounds = array<i64: 1, 2048, 64>}, {transform_indices = @transform_7, window_bounds = array<i64: 1, 8, 64>}, {transform_indices = @transform_8, window_bounds = array<i64: 1, 8, 64>}]} {
    %c0_i32 = arith.constant 0 : i32
    %0 = arith.cmpi eq, %arg1, %c0_i32 : i32
    %1 = arith.extui %0 : i1 to i32
    %c0_i32_0 = arith.constant 0 : i32
    %2 = arith.cmpi ne, %1, %c0_i32_0 : i32
    scf.if %2 {
      %c0_157 = arith.constant 0 : index
      %c0_158 = arith.constant 0 : index
      %c0_159 = arith.constant 0 : index
      %264 = vector.load %arg2[%c0_157, %c0_158, %c0_159] : memref<1x8x64xf32, #tpu.memory_space<vmem>>, vector<1x8x64xf32>
      %265 = vector.shape_cast %264 : vector<1x8x64xf32> to vector<8x64xf32>
      %c0_160 = arith.constant 0 : index
      %c0_161 = arith.constant 0 : index
      %266 = vector.load %arg11[%c0_160, %c0_161] : memref<8x64xf32, #tpu.memory_space<vmem>>, vector<8x64xf32>
      tpu.vector_store %arg11[%c0_160, %c0_161], %265 {strides = array<i32>} : memref<8x64xf32, #tpu.memory_space<vmem>>, vector<8x64xf32>,
    } else {
    }
    %c0 = arith.constant 0 : index
    %c0_1 = arith.constant 0 : index
    %3 = vector.load %arg11[%c0, %c0_1] : memref<8x64xf32, #tpu.memory_space<vmem>>, vector<8x64xf32>
    %c0_2 = arith.constant 0 : index
    %c0_3 = arith.constant 0 : index
    %c0_4 = arith.constant 0 : index
    %4 = vector.load %arg9[%c0_2, %c0_3, %c0_4] : memref<1x8x64xf32, #tpu.memory_space<vmem>>, vector<1x8x64xf32>
    %5 = vector.shape_cast %4 : vector<1x8x64xf32> to vector<8x64xf32>
    %6 = tpu.iota {dimensions = array<i32: 0>} : vector<8x8xi32>
    %7 = tpu.iota {dimensions = array<i32: 1>} : vector<8x8xi32>
    %8 = arith.cmpi sle, %7, %6 : vector<8x8xi32>
    %cst = arith.constant 0.000000e+00 : f32
    %cst_5 = arith.constant -1.000000e+30 : f32
    %9 = vector.broadcast %cst : f32 to vector<8x8xf32>
    %10 = vector.broadcast %cst_5 : f32 to vector<8x8xf32>
    %11 = arith.select %8, %9, %10 : vector<8x8xi1>, vector<8x8xf32>
    %12 = arith.truncf %3 : vector<8x64xf32> to vector<8x64xbf16>
    %cst_6 = arith.constant 0.000000e+00 : f32
    %13 = vector.broadcast %cst_6 : f32 to vector<8x64xf32>
    %c0_7 = arith.constant 0 : index
    %c0_8 = arith.constant 0 : index
    %c0_9 = arith.constant 0 : index
    %c0_10 = arith.constant 0 : index
    %14 = vector.load %arg3[%c0_7, %c0_8, %c0_9, %c0_10] : memref<1x12x64x16xbf16, #tpu.memory_space<vmem>>, vector<1x1x64x16xbf16>
    %15 = vector.shape_cast %14 : vector<1x1x64x16xbf16> to vector<64x16xbf16>
    %cst_11 = arith.constant dense<0.000000e+00> : vector<8x16xf32>
    %16 = tpu.matmul %12, %15, %cst_11 {dimension_numbers = #tpu.dot_dimension_numbers<[1], [0], [0], [1], [0, 0, 1, 1], [], []>} : vector<8x64xbf16>, vector<64x16xbf16>, vector<8x16xf32> -> vector<8x16xf32>
    %c0_12 = arith.constant 0 : index
    %c0_13 = arith.constant 0 : index
    %c0_14 = arith.constant 0 : index
    %17 = vector.load %arg4[%c0_12, %c0_13, %c0_14] : memref<1x12x16xf32, #tpu.memory_space<vmem>>, vector<1x1x16xf32>
    %18 = vector.shape_cast %17 : vector<1x1x16xf32> to vector<1x16xf32>
    %19 = vector.broadcast %18 : vector<1x16xf32> to vector<8x16xf32>
    %20 = arith.addf %16, %19 : vector<8x16xf32>
    %cst_15 = arith.constant 2.500000e-01 : f32
    %21 = vector.broadcast %cst_15 : f32 to vector<8x16xf32>
    %22 = arith.mulf %20, %21 : vector<8x16xf32>
    %23 = arith.truncf %22 : vector<8x16xf32> to vector<8x16xbf16>
    %c0_16 = arith.constant 0 : index
    %c4 = arith.constant 4 : index
    %c0_17 = arith.constant 0 : index
    %c0_18 = arith.constant 0 : index
    %24 = vector.load %arg3[%c0_16, %c4, %c0_17, %c0_18] : memref<1x12x64x16xbf16, #tpu.memory_space<vmem>>, vector<1x1x64x16xbf16>
    %25 = vector.shape_cast %24 : vector<1x1x64x16xbf16> to vector<64x16xbf16>
    %cst_19 = arith.constant dense<0.000000e+00> : vector<8x16xf32>
    %26 = tpu.matmul %12, %25, %cst_19 {dimension_numbers = #tpu.dot_dimension_numbers<[1], [0], [0], [1], [0, 0, 1, 1], [], []>} : vector<8x64xbf16>, vector<64x16xbf16>, vector<8x16xf32> -> vector<8x16xf32>
    %c0_20 = arith.constant 0 : index
    %c4_21 = arith.constant 4 : index
    %c0_22 = arith.constant 0 : index
    %27 = vector.load %arg4[%c0_20, %c4_21, %c0_22] : memref<1x12x16xf32, #tpu.memory_space<vmem>>, vector<1x1x16xf32>
    %28 = vector.shape_cast %27 : vector<1x1x16xf32> to vector<1x16xf32>
    %29 = vector.broadcast %28 : vector<1x16xf32> to vector<8x16xf32>
    %30 = arith.addf %26, %29 : vector<8x16xf32>
    %31 = arith.truncf %30 : vector<8x16xf32> to vector<8x16xbf16>
    %c0_23 = arith.constant 0 : index
    %c8 = arith.constant 8 : index
    %c0_24 = arith.constant 0 : index
    %c0_25 = arith.constant 0 : index
    %32 = vector.load %arg3[%c0_23, %c8, %c0_24, %c0_25] : memref<1x12x64x16xbf16, #tpu.memory_space<vmem>>, vector<1x1x64x16xbf16>
    %33 = vector.shape_cast %32 : vector<1x1x64x16xbf16> to vector<64x16xbf16>
    %cst_26 = arith.constant dense<0.000000e+00> : vector<8x16xf32>
    %34 = tpu.matmul %12, %33, %cst_26 {dimension_numbers = #tpu.dot_dimension_numbers<[1], [0], [0], [1], [0, 0, 1, 1], [], []>} : vector<8x64xbf16>, vector<64x16xbf16>, vector<8x16xf32> -> vector<8x16xf32>
    %c0_27 = arith.constant 0 : index
    %c8_28 = arith.constant 8 : index
    %c0_29 = arith.constant 0 : index
    %35 = vector.load %arg4[%c0_27, %c8_28, %c0_29] : memref<1x12x16xf32, #tpu.memory_space<vmem>>, vector<1x1x16xf32>
    %36 = vector.shape_cast %35 : vector<1x1x16xf32> to vector<1x16xf32>
    %37 = vector.broadcast %36 : vector<1x16xf32> to vector<8x16xf32>
    %38 = arith.addf %34, %37 : vector<8x16xf32>
    %39 = arith.truncf %38 : vector<8x16xf32> to vector<8x16xbf16>
    %cst_30 = arith.constant dense<0.000000e+00> : vector<8x8xf32>
    %40 = tpu.matmul %23, %31, %cst_30 {dimension_numbers = #tpu.dot_dimension_numbers<[1], [1], [0], [0], [0, 0, 1, 0], [], []>} : vector<8x16xbf16>, vector<8x16xbf16>, vector<8x8xf32> -> vector<8x8xf32>
    %41 = arith.addf %40, %11 : vector<8x8xf32>
    %cst_31 = arith.constant dense<0xFF800000> : vector<8xf32>
    %42 = vector.multi_reduction <maximumf>, %41, %cst_31 [1] : vector<8x8xf32> to vector<8xf32>
    %43 = vector.shape_cast %42 : vector<8xf32> to vector<8x1xf32>
    %44 = vector.broadcast %43 : vector<8x1xf32> to vector<8x8xf32>
    %45 = arith.subf %41, %44 : vector<8x8xf32>
    %46 = math.exp %45 : vector<8x8xf32>
    %cst_32 = arith.constant dense<0.000000e+00> : vector<8xf32>
    %47 = vector.multi_reduction <add>, %46, %cst_32 [1] : vector<8x8xf32> to vector<8xf32>
    %48 = vector.shape_cast %47 : vector<8xf32> to vector<8x1xf32>
    %49 = tpu.reciprocal %48 {approx = true} : vector<8x1xf32> -> vector<8x1xf32>
    %50 = vector.broadcast %49 : vector<8x1xf32> to vector<8x8xf32>
    %51 = arith.mulf %46, %50 : vector<8x8xf32>
    %52 = arith.truncf %51 : vector<8x8xf32> to vector<8x8xbf16>
    %cst_33 = arith.constant dense<0.000000e+00> : vector<8x16xf32>
    %53 = tpu.matmul %52, %39, %cst_33 {dimension_numbers = #tpu.dot_dimension_numbers<[1], [0], [0], [1], [0, 0, 1, 1], [], []>} : vector<8x8xbf16>, vector<8x16xbf16>, vector<8x16xf32> -> vector<8x16xf32>
    %c0_34 = arith.constant 0 : index
    %c0_35 = arith.constant 0 : index
    %c0_36 = arith.constant 0 : index
    %c0_37 = arith.constant 0 : index
    %54 = vector.load %arg5[%c0_34, %c0_35, %c0_36, %c0_37] : memref<1x4x16x64xbf16, #tpu.memory_space<vmem>>, vector<1x1x16x64xbf16>
    %55 = vector.shape_cast %54 : vector<1x1x16x64xbf16> to vector<16x64xbf16>
    %56 = arith.truncf %53 : vector<8x16xf32> to vector<8x16xbf16>
    %cst_38 = arith.constant dense<0.000000e+00> : vector<8x64xf32>
    %57 = tpu.matmul %56, %55, %cst_38 {dimension_numbers = #tpu.dot_dimension_numbers<[1], [0], [0], [1], [0, 0, 1, 1], [], []>} : vector<8x16xbf16>, vector<16x64xbf16>, vector<8x64xf32> -> vector<8x64xf32>
    %58 = arith.addf %13, %57 : vector<8x64xf32>
    %c0_39 = arith.constant 0 : index
    %c1 = arith.constant 1 : index
    %c0_40 = arith.constant 0 : index
    %c0_41 = arith.constant 0 : index
    %59 = vector.load %arg3[%c0_39, %c1, %c0_40, %c0_41] : memref<1x12x64x16xbf16, #tpu.memory_space<vmem>>, vector<1x1x64x16xbf16>
    %60 = vector.shape_cast %59 : vector<1x1x64x16xbf16> to vector<64x16xbf16>
    %cst_42 = arith.constant dense<0.000000e+00> : vector<8x16xf32>
    %61 = tpu.matmul %12, %60, %cst_42 {dimension_numbers = #tpu.dot_dimension_numbers<[1], [0], [0], [1], [0, 0, 1, 1], [], []>} : vector<8x64xbf16>, vector<64x16xbf16>, vector<8x16xf32> -> vector<8x16xf32>
    %c0_43 = arith.constant 0 : index
    %c1_44 = arith.constant 1 : index
    %c0_45 = arith.constant 0 : index
    %62 = vector.load %arg4[%c0_43, %c1_44, %c0_45] : memref<1x12x16xf32, #tpu.memory_space<vmem>>, vector<1x1x16xf32>
    %63 = vector.shape_cast %62 : vector<1x1x16xf32> to vector<1x16xf32>
    %64 = vector.broadcast %63 : vector<1x16xf32> to vector<8x16xf32>
    %65 = arith.addf %61, %64 : vector<8x16xf32>
    %cst_46 = arith.constant 2.500000e-01 : f32
    %66 = vector.broadcast %cst_46 : f32 to vector<8x16xf32>
    %67 = arith.mulf %65, %66 : vector<8x16xf32>
    %68 = arith.truncf %67 : vector<8x16xf32> to vector<8x16xbf16>
    %c0_47 = arith.constant 0 : index
    %c5 = arith.constant 5 : index
    %c0_48 = arith.constant 0 : index
    %c0_49 = arith.constant 0 : index
    %69 = vector.load %arg3[%c0_47, %c5, %c0_48, %c0_49] : memref<1x12x64x16xbf16, #tpu.memory_space<vmem>>, vector<1x1x64x16xbf16>
    %70 = vector.shape_cast %69 : vector<1x1x64x16xbf16> to vector<64x16xbf16>
    %cst_50 = arith.constant dense<0.000000e+00> : vector<8x16xf32>
    %71 = tpu.matmul %12, %70, %cst_50 {dimension_numbers = #tpu.dot_dimension_numbers<[1], [0], [0], [1], [0, 0, 1, 1], [], []>} : vector<8x64xbf16>, vector<64x16xbf16>, vector<8x16xf32> -> vector<8x16xf32>
    %c0_51 = arith.constant 0 : index
    %c5_52 = arith.constant 5 : index
    %c0_53 = arith.constant 0 : index
    %72 = vector.load %arg4[%c0_51, %c5_52, %c0_53] : memref<1x12x16xf32, #tpu.memory_space<vmem>>, vector<1x1x16xf32>
    %73 = vector.shape_cast %72 : vector<1x1x16xf32> to vector<1x16xf32>
    %74 = vector.broadcast %73 : vector<1x16xf32> to vector<8x16xf32>
    %75 = arith.addf %71, %74 : vector<8x16xf32>
    %76 = arith.truncf %75 : vector<8x16xf32> to vector<8x16xbf16>
    %c0_54 = arith.constant 0 : index
    %c9 = arith.constant 9 : index
    %c0_55 = arith.constant 0 : index
    %c0_56 = arith.constant 0 : index
    %77 = vector.load %arg3[%c0_54, %c9, %c0_55, %c0_56] : memref<1x12x64x16xbf16, #tpu.memory_space<vmem>>, vector<1x1x64x16xbf16>
    %78 = vector.shape_cast %77 : vector<1x1x64x16xbf16> to vector<64x16xbf16>
    %cst_57 = arith.constant dense<0.000000e+00> : vector<8x16xf32>
    %79 = tpu.matmul %12, %78, %cst_57 {dimension_numbers = #tpu.dot_dimension_numbers<[1], [0], [0], [1], [0, 0, 1, 1], [], []>} : vector<8x64xbf16>, vector<64x16xbf16>, vector<8x16xf32> -> vector<8x16xf32>
    %c0_58 = arith.constant 0 : index
    %c9_59 = arith.constant 9 : index
    %c0_60 = arith.constant 0 : index
    %80 = vector.load %arg4[%c0_58, %c9_59, %c0_60] : memref<1x12x16xf32, #tpu.memory_space<vmem>>, vector<1x1x16xf32>
    %81 = vector.shape_cast %80 : vector<1x1x16xf32> to vector<1x16xf32>
    %82 = vector.broadcast %81 : vector<1x16xf32> to vector<8x16xf32>
    %83 = arith.addf %79, %82 : vector<8x16xf32>
    %84 = arith.truncf %83 : vector<8x16xf32> to vector<8x16xbf16>
    %cst_61 = arith.constant dense<0.000000e+00> : vector<8x8xf32>
    %85 = tpu.matmul %68, %76, %cst_61 {dimension_numbers = #tpu.dot_dimension_numbers<[1], [1], [0], [0], [0, 0, 1, 0], [], []>} : vector<8x16xbf16>, vector<8x16xbf16>, vector<8x8xf32> -> vector<8x8xf32>
    %86 = arith.addf %85, %11 : vector<8x8xf32>
    %cst_62 = arith.constant dense<0xFF800000> : vector<8xf32>
    %87 = vector.multi_reduction <maximumf>, %86, %cst_62 [1] : vector<8x8xf32> to vector<8xf32>
    %88 = vector.shape_cast %87 : vector<8xf32> to vector<8x1xf32>
    %89 = vector.broadcast %88 : vector<8x1xf32> to vector<8x8xf32>
    %90 = arith.subf %86, %89 : vector<8x8xf32>
    %91 = math.exp %90 : vector<8x8xf32>
    %cst_63 = arith.constant dense<0.000000e+00> : vector<8xf32>
    %92 = vector.multi_reduction <add>, %91, %cst_63 [1] : vector<8x8xf32> to vector<8xf32>
    %93 = vector.shape_cast %92 : vector<8xf32> to vector<8x1xf32>
    %94 = tpu.reciprocal %93 {approx = true} : vector<8x1xf32> -> vector<8x1xf32>
    %95 = vector.broadcast %94 : vector<8x1xf32> to vector<8x8xf32>
    %96 = arith.mulf %91, %95 : vector<8x8xf32>
    %97 = arith.truncf %96 : vector<8x8xf32> to vector<8x8xbf16>
    %cst_64 = arith.constant dense<0.000000e+00> : vector<8x16xf32>
    %98 = tpu.matmul %97, %84, %cst_64 {dimension_numbers = #tpu.dot_dimension_numbers<[1], [0], [0], [1], [0, 0, 1, 1], [], []>} : vector<8x8xbf16>, vector<8x16xbf16>, vector<8x16xf32> -> vector<8x16xf32>
    %c0_65 = arith.constant 0 : index
    %c1_66 = arith.constant 1 : index
    %c0_67 = arith.constant 0 : index
    %c0_68 = arith.constant 0 : index
    %99 = vector.load %arg5[%c0_65, %c1_66, %c0_67, %c0_68] : memref<1x4x16x64xbf16, #tpu.memory_space<vmem>>, vector<1x1x16x64xbf16>
    %100 = vector.shape_cast %99 : vector<1x1x16x64xbf16> to vector<16x64xbf16>
    %101 = arith.truncf %98 : vector<8x16xf32> to vector<8x16xbf16>
    %cst_69 = arith.constant dense<0.000000e+00> : vector<8x64xf32>
    %102 = tpu.matmul %101, %100, %cst_69 {dimension_numbers = #tpu.dot_dimension_numbers<[1], [0], [0], [1], [0, 0, 1, 1], [], []>} : vector<8x16xbf16>, vector<16x64xbf16>, vector<8x64xf32> -> vector<8x64xf32>
    %103 = arith.addf %58, %102 : vector<8x64xf32>
    %c0_70 = arith.constant 0 : index
    %c2 = arith.constant 2 : index
    %c0_71 = arith.constant 0 : index
    %c0_72 = arith.constant 0 : index
    %104 = vector.load %arg3[%c0_70, %c2, %c0_71, %c0_72] : memref<1x12x64x16xbf16, #tpu.memory_space<vmem>>, vector<1x1x64x16xbf16>
    %105 = vector.shape_cast %104 : vector<1x1x64x16xbf16> to vector<64x16xbf16>
    %cst_73 = arith.constant dense<0.000000e+00> : vector<8x16xf32>
    %106 = tpu.matmul %12, %105, %cst_73 {dimension_numbers = #tpu.dot_dimension_numbers<[1], [0], [0], [1], [0, 0, 1, 1], [], []>} : vector<8x64xbf16>, vector<64x16xbf16>, vector<8x16xf32> -> vector<8x16xf32>
    %c0_74 = arith.constant 0 : index
    %c2_75 = arith.constant 2 : index
    %c0_76 = arith.constant 0 : index
    %107 = vector.load %arg4[%c0_74, %c2_75, %c0_76] : memref<1x12x16xf32, #tpu.memory_space<vmem>>, vector<1x1x16xf32>
    %108 = vector.shape_cast %107 : vector<1x1x16xf32> to vector<1x16xf32>
    %109 = vector.broadcast %108 : vector<1x16xf32> to vector<8x16xf32>
    %110 = arith.addf %106, %109 : vector<8x16xf32>
    %cst_77 = arith.constant 2.500000e-01 : f32
    %111 = vector.broadcast %cst_77 : f32 to vector<8x16xf32>
    %112 = arith.mulf %110, %111 : vector<8x16xf32>
    %113 = arith.truncf %112 : vector<8x16xf32> to vector<8x16xbf16>
    %c0_78 = arith.constant 0 : index
    %c6 = arith.constant 6 : index
    %c0_79 = arith.constant 0 : index
    %c0_80 = arith.constant 0 : index
    %114 = vector.load %arg3[%c0_78, %c6, %c0_79, %c0_80] : memref<1x12x64x16xbf16, #tpu.memory_space<vmem>>, vector<1x1x64x16xbf16>
    %115 = vector.shape_cast %114 : vector<1x1x64x16xbf16> to vector<64x16xbf16>
    %cst_81 = arith.constant dense<0.000000e+00> : vector<8x16xf32>
    %116 = tpu.matmul %12, %115, %cst_81 {dimension_numbers = #tpu.dot_dimension_numbers<[1], [0], [0], [1], [0, 0, 1, 1], [], []>} : vector<8x64xbf16>, vector<64x16xbf16>, vector<8x16xf32> -> vector<8x16xf32>
    %c0_82 = arith.constant 0 : index
    %c6_83 = arith.constant 6 : index
    %c0_84 = arith.constant 0 : index
    %117 = vector.load %arg4[%c0_82, %c6_83, %c0_84] : memref<1x12x16xf32, #tpu.memory_space<vmem>>, vector<1x1x16xf32>
    %118 = vector.shape_cast %117 : vector<1x1x16xf32> to vector<1x16xf32>
    %119 = vector.broadcast %118 : vector<1x16xf32> to vector<8x16xf32>
    %120 = arith.addf %116, %119 : vector<8x16xf32>
    %121 = arith.truncf %120 : vector<8x16xf32> to vector<8x16xbf16>
    %c0_85 = arith.constant 0 : index
    %c10 = arith.constant 10 : index
    %c0_86 = arith.constant 0 : index
    %c0_87 = arith.constant 0 : index
    %122 = vector.load %arg3[%c0_85, %c10, %c0_86, %c0_87] : memref<1x12x64x16xbf16, #tpu.memory_space<vmem>>, vector<1x1x64x16xbf16>
    %123 = vector.shape_cast %122 : vector<1x1x64x16xbf16> to vector<64x16xbf16>
    %cst_88 = arith.constant dense<0.000000e+00> : vector<8x16xf32>
    %124 = tpu.matmul %12, %123, %cst_88 {dimension_numbers = #tpu.dot_dimension_numbers<[1], [0], [0], [1], [0, 0, 1, 1], [], []>} : vector<8x64xbf16>, vector<64x16xbf16>, vector<8x16xf32> -> vector<8x16xf32>
    %c0_89 = arith.constant 0 : index
    %c10_90 = arith.constant 10 : index
    %c0_91 = arith.constant 0 : index
    %125 = vector.load %arg4[%c0_89, %c10_90, %c0_91] : memref<1x12x16xf32, #tpu.memory_space<vmem>>, vector<1x1x16xf32>
    %126 = vector.shape_cast %125 : vector<1x1x16xf32> to vector<1x16xf32>
    %127 = vector.broadcast %126 : vector<1x16xf32> to vector<8x16xf32>
    %128 = arith.addf %124, %127 : vector<8x16xf32>
    %129 = arith.truncf %128 : vector<8x16xf32> to vector<8x16xbf16>
    %cst_92 = arith.constant dense<0.000000e+00> : vector<8x8xf32>
    %130 = tpu.matmul %113, %121, %cst_92 {dimension_numbers = #tpu.dot_dimension_numbers<[1], [1], [0], [0], [0, 0, 1, 0], [], []>} : vector<8x16xbf16>, vector<8x16xbf16>, vector<8x8xf32> -> vector<8x8xf32>
    %131 = arith.addf %130, %11 : vector<8x8xf32>
    %cst_93 = arith.constant dense<0xFF800000> : vector<8xf32>
    %132 = vector.multi_reduction <maximumf>, %131, %cst_93 [1] : vector<8x8xf32> to vector<8xf32>
    %133 = vector.shape_cast %132 : vector<8xf32> to vector<8x1xf32>
    %134 = vector.broadcast %133 : vector<8x1xf32> to vector<8x8xf32>
    %135 = arith.subf %131, %134 : vector<8x8xf32>
    %136 = math.exp %135 : vector<8x8xf32>
    %cst_94 = arith.constant dense<0.000000e+00> : vector<8xf32>
    %137 = vector.multi_reduction <add>, %136, %cst_94 [1] : vector<8x8xf32> to vector<8xf32>
    %138 = vector.shape_cast %137 : vector<8xf32> to vector<8x1xf32>
    %139 = tpu.reciprocal %138 {approx = true} : vector<8x1xf32> -> vector<8x1xf32>
    %140 = vector.broadcast %139 : vector<8x1xf32> to vector<8x8xf32>
    %141 = arith.mulf %136, %140 : vector<8x8xf32>
    %142 = arith.truncf %141 : vector<8x8xf32> to vector<8x8xbf16>
    %cst_95 = arith.constant dense<0.000000e+00> : vector<8x16xf32>
    %143 = tpu.matmul %142, %129, %cst_95 {dimension_numbers = #tpu.dot_dimension_numbers<[1], [0], [0], [1], [0, 0, 1, 1], [], []>} : vector<8x8xbf16>, vector<8x16xbf16>, vector<8x16xf32> -> vector<8x16xf32>
    %c0_96 = arith.constant 0 : index
    %c2_97 = arith.constant 2 : index
    %c0_98 = arith.constant 0 : index
    %c0_99 = arith.constant 0 : index
    %144 = vector.load %arg5[%c0_96, %c2_97, %c0_98, %c0_99] : memref<1x4x16x64xbf16, #tpu.memory_space<vmem>>, vector<1x1x16x64xbf16>
    %145 = vector.shape_cast %144 : vector<1x1x16x64xbf16> to vector<16x64xbf16>
    %146 = arith.truncf %143 : vector<8x16xf32> to vector<8x16xbf16>
    %cst_100 = arith.constant dense<0.000000e+00> : vector<8x64xf32>
    %147 = tpu.matmul %146, %145, %cst_100 {dimension_numbers = #tpu.dot_dimension_numbers<[1], [0], [0], [1], [0, 0, 1, 1], [], []>} : vector<8x16xbf16>, vector<16x64xbf16>, vector<8x64xf32> -> vector<8x64xf32>
    %148 = arith.addf %103, %147 : vector<8x64xf32>
    %c0_101 = arith.constant 0 : index
    %c3 = arith.constant 3 : index
    %c0_102 = arith.constant 0 : index
    %c0_103 = arith.constant 0 : index
    %149 = vector.load %arg3[%c0_101, %c3, %c0_102, %c0_103] : memref<1x12x64x16xbf16, #tpu.memory_space<vmem>>, vector<1x1x64x16xbf16>
    %150 = vector.shape_cast %149 : vector<1x1x64x16xbf16> to vector<64x16xbf16>
    %cst_104 = arith.constant dense<0.000000e+00> : vector<8x16xf32>
    %151 = tpu.matmul %12, %150, %cst_104 {dimension_numbers = #tpu.dot_dimension_numbers<[1], [0], [0], [1], [0, 0, 1, 1], [], []>} : vector<8x64xbf16>, vector<64x16xbf16>, vector<8x16xf32> -> vector<8x16xf32>
    %c0_105 = arith.constant 0 : index
    %c3_106 = arith.constant 3 : index
    %c0_107 = arith.constant 0 : index
    %152 = vector.load %arg4[%c0_105, %c3_106, %c0_107] : memref<1x12x16xf32, #tpu.memory_space<vmem>>, vector<1x1x16xf32>
    %153 = vector.shape_cast %152 : vector<1x1x16xf32> to vector<1x16xf32>
    %154 = vector.broadcast %153 : vector<1x16xf32> to vector<8x16xf32>
    %155 = arith.addf %151, %154 : vector<8x16xf32>
    %cst_108 = arith.constant 2.500000e-01 : f32
    %156 = vector.broadcast %cst_108 : f32 to vector<8x16xf32>
    %157 = arith.mulf %155, %156 : vector<8x16xf32>
    %158 = arith.truncf %157 : vector<8x16xf32> to vector<8x16xbf16>
    %c0_109 = arith.constant 0 : index
    %c7 = arith.constant 7 : index
    %c0_110 = arith.constant 0 : index
    %c0_111 = arith.constant 0 : index
    %159 = vector.load %arg3[%c0_109, %c7, %c0_110, %c0_111] : memref<1x12x64x16xbf16, #tpu.memory_space<vmem>>, vector<1x1x64x16xbf16>
    %160 = vector.shape_cast %159 : vector<1x1x64x16xbf16> to vector<64x16xbf16>
    %cst_112 = arith.constant dense<0.000000e+00> : vector<8x16xf32>
    %161 = tpu.matmul %12, %160, %cst_112 {dimension_numbers = #tpu.dot_dimension_numbers<[1], [0], [0], [1], [0, 0, 1, 1], [], []>} : vector<8x64xbf16>, vector<64x16xbf16>, vector<8x16xf32> -> vector<8x16xf32>
    %c0_113 = arith.constant 0 : index
    %c7_114 = arith.constant 7 : index
    %c0_115 = arith.constant 0 : index
    %162 = vector.load %arg4[%c0_113, %c7_114, %c0_115] : memref<1x12x16xf32, #tpu.memory_space<vmem>>, vector<1x1x16xf32>
    %163 = vector.shape_cast %162 : vector<1x1x16xf32> to vector<1x16xf32>
    %164 = vector.broadcast %163 : vector<1x16xf32> to vector<8x16xf32>
    %165 = arith.addf %161, %164 : vector<8x16xf32>
    %166 = arith.truncf %165 : vector<8x16xf32> to vector<8x16xbf16>
    %c0_116 = arith.constant 0 : index
    %c11 = arith.constant 11 : index
    %c0_117 = arith.constant 0 : index
    %c0_118 = arith.constant 0 : index
    %167 = vector.load %arg3[%c0_116, %c11, %c0_117, %c0_118] : memref<1x12x64x16xbf16, #tpu.memory_space<vmem>>, vector<1x1x64x16xbf16>
    %168 = vector.shape_cast %167 : vector<1x1x64x16xbf16> to vector<64x16xbf16>
    %cst_119 = arith.constant dense<0.000000e+00> : vector<8x16xf32>
    %169 = tpu.matmul %12, %168, %cst_119 {dimension_numbers = #tpu.dot_dimension_numbers<[1], [0], [0], [1], [0, 0, 1, 1], [], []>} : vector<8x64xbf16>, vector<64x16xbf16>, vector<8x16xf32> -> vector<8x16xf32>
    %c0_120 = arith.constant 0 : index
    %c11_121 = arith.constant 11 : index
    %c0_122 = arith.constant 0 : index
    %170 = vector.load %arg4[%c0_120, %c11_121, %c0_122] : memref<1x12x16xf32, #tpu.memory_space<vmem>>, vector<1x1x16xf32>
    %171 = vector.shape_cast %170 : vector<1x1x16xf32> to vector<1x16xf32>
    %172 = vector.broadcast %171 : vector<1x16xf32> to vector<8x16xf32>
    %173 = arith.addf %169, %172 : vector<8x16xf32>
    %174 = arith.truncf %173 : vector<8x16xf32> to vector<8x16xbf16>
    %cst_123 = arith.constant dense<0.000000e+00> : vector<8x8xf32>
    %175 = tpu.matmul %158, %166, %cst_123 {dimension_numbers = #tpu.dot_dimension_numbers<[1], [1], [0], [0], [0, 0, 1, 0], [], []>} : vector<8x16xbf16>, vector<8x16xbf16>, vector<8x8xf32> -> vector<8x8xf32>
    %176 = arith.addf %175, %11 : vector<8x8xf32>
    %cst_124 = arith.constant dense<0xFF800000> : vector<8xf32>
    %177 = vector.multi_reduction <maximumf>, %176, %cst_124 [1] : vector<8x8xf32> to vector<8xf32>
    %178 = vector.shape_cast %177 : vector<8xf32> to vector<8x1xf32>
    %179 = vector.broadcast %178 : vector<8x1xf32> to vector<8x8xf32>
    %180 = arith.subf %176, %179 : vector<8x8xf32>
    %181 = math.exp %180 : vector<8x8xf32>
    %cst_125 = arith.constant dense<0.000000e+00> : vector<8xf32>
    %182 = vector.multi_reduction <add>, %181, %cst_125 [1] : vector<8x8xf32> to vector<8xf32>
    %183 = vector.shape_cast %182 : vector<8xf32> to vector<8x1xf32>
    %184 = tpu.reciprocal %183 {approx = true} : vector<8x1xf32> -> vector<8x1xf32>
    %185 = vector.broadcast %184 : vector<8x1xf32> to vector<8x8xf32>
    %186 = arith.mulf %181, %185 : vector<8x8xf32>
    %187 = arith.truncf %186 : vector<8x8xf32> to vector<8x8xbf16>
    %cst_126 = arith.constant dense<0.000000e+00> : vector<8x16xf32>
    %188 = tpu.matmul %187, %174, %cst_126 {dimension_numbers = #tpu.dot_dimension_numbers<[1], [0], [0], [1], [0, 0, 1, 1], [], []>} : vector<8x8xbf16>, vector<8x16xbf16>, vector<8x16xf32> -> vector<8x16xf32>
    %c0_127 = arith.constant 0 : index
    %c3_128 = arith.constant 3 : index
    %c0_129 = arith.constant 0 : index
    %c0_130 = arith.constant 0 : index
    %189 = vector.load %arg5[%c0_127, %c3_128, %c0_129, %c0_130] : memref<1x4x16x64xbf16, #tpu.memory_space<vmem>>, vector<1x1x16x64xbf16>
    %190 = vector.shape_cast %189 : vector<1x1x16x64xbf16> to vector<16x64xbf16>
    %191 = arith.truncf %188 : vector<8x16xf32> to vector<8x16xbf16>
    %cst_131 = arith.constant dense<0.000000e+00> : vector<8x64xf32>
    %192 = tpu.matmul %191, %190, %cst_131 {dimension_numbers = #tpu.dot_dimension_numbers<[1], [0], [0], [1], [0, 0, 1, 1], [], []>} : vector<8x16xbf16>, vector<16x64xbf16>, vector<8x64xf32> -> vector<8x64xf32>
    %193 = arith.addf %148, %192 : vector<8x64xf32>
    %194 = vector.extract_strided_slice %5 {offsets = [0, 0], sizes = [1, 64], strides = [1, 1]} : vector<8x64xf32> to vector<1x64xf32>
    %195 = vector.broadcast %194 : vector<1x64xf32> to vector<8x64xf32>
    %196 = arith.addf %193, %195 : vector<8x64xf32>
    %197 = arith.addf %3, %196 : vector<8x64xf32>
    %198 = vector.extract_strided_slice %5 {offsets = [1, 0], sizes = [1, 64], strides = [1, 1]} : vector<8x64xf32> to vector<1x64xf32>
    %199 = vector.extract_strided_slice %5 {offsets = [2, 0], sizes = [1, 64], strides = [1, 1]} : vector<8x64xf32> to vector<1x64xf32>
    %cst_132 = arith.constant dense<0.000000e+00> : vector<8xf32>
    %200 = vector.multi_reduction <add>, %197, %cst_132 [1] : vector<8x64xf32> to vector<8xf32>
    %201 = vector.shape_cast %200 : vector<8xf32> to vector<8x1xf32>
    %cst_133 = arith.constant 6.400000e+01 : f32
    %202 = vector.broadcast %cst_133 : f32 to vector<8x1xf32>
    %203 = arith.divf %201, %202 : vector<8x1xf32>
    %204 = vector.broadcast %203 : vector<8x1xf32> to vector<8x64xf32>
    %205 = arith.subf %197, %204 : vector<8x64xf32>
    %206 = arith.mulf %205, %205 : vector<8x64xf32>
    %cst_134 = arith.constant dense<0.000000e+00> : vector<8xf32>
    %207 = vector.multi_reduction <add>, %206, %cst_134 [1] : vector<8x64xf32> to vector<8xf32>
    %208 = vector.shape_cast %207 : vector<8xf32> to vector<8x1xf32>
    %cst_135 = arith.constant 6.400000e+01 : f32
    %209 = vector.broadcast %cst_135 : f32 to vector<8x1xf32>
    %210 = arith.divf %208, %209 : vector<8x1xf32>
    %cst_136 = arith.constant 9.99999974E-6 : f32
    %211 = vector.broadcast %cst_136 : f32 to vector<8x1xf32>
    %212 = arith.addf %210, %211 : vector<8x1xf32>
    %213 = math.rsqrt %212 : vector<8x1xf32>
    %214 = vector.broadcast %213 : vector<8x1xf32> to vector<8x64xf32>
    %215 = arith.mulf %205, %214 : vector<8x64xf32>
    %216 = vector.broadcast %198 : vector<1x64xf32> to vector<8x64xf32>
    %217 = arith.mulf %215, %216 : vector<8x64xf32>
    %218 = vector.broadcast %199 : vector<1x64xf32> to vector<8x64xf32>
    %219 = arith.addf %217, %218 : vector<8x64xf32>
    %c0_137 = arith.constant 0 : index
    %c0_138 = arith.constant 0 : index
    %c0_139 = arith.constant 0 : index
    %220 = vector.load %arg6[%c0_137, %c0_138, %c0_139] : memref<1x64x2048xbf16, #tpu.memory_space<vmem>>, vector<1x64x2048xbf16>
    %221 = vector.shape_cast %220 : vector<1x64x2048xbf16> to vector<64x2048xbf16>
    %222 = arith.truncf %219 : vector<8x64xf32> to vector<8x64xbf16>
    %cst_140 = arith.constant dense<0.000000e+00> : vector<8x2048xf32>
    %223 = tpu.matmul %222, %221, %cst_140 {dimension_numbers = #tpu.dot_dimension_numbers<[1], [0], [0], [1], [0, 0, 1, 1], [], []>} : vector<8x64xbf16>, vector<64x2048xbf16>, vector<8x2048xf32> -> vector<8x2048xf32>
    %c0_141 = arith.constant 0 : index
    %c0_142 = arith.constant 0 : index
    %c0_143 = arith.constant 0 : index
    %224 = vector.load %arg7[%c0_141, %c0_142, %c0_143] : memref<1x1x2048xf32, #tpu.memory_space<vmem>>, vector<1x1x2048xf32>
    %225 = vector.shape_cast %224 : vector<1x1x2048xf32> to vector<1x2048xf32>
    %226 = vector.broadcast %225 : vector<1x2048xf32> to vector<8x2048xf32>
    %227 = arith.addf %223, %226 : vector<8x2048xf32>
    %cst_144 = arith.constant 0.000000e+00 : f32
    %228 = vector.broadcast %cst_144 : f32 to vector<8x2048xf32>
    %229 = arith.maximumf %227, %228 : vector<8x2048xf32>
    %230 = arith.truncf %229 : vector<8x2048xf32> to vector<8x2048xbf16>
    %c0_145 = arith.constant 0 : index
    %c0_146 = arith.constant 0 : index
    %c0_147 = arith.constant 0 : index
    %231 = vector.load %arg8[%c0_145, %c0_146, %c0_147] : memref<1x2048x64xbf16, #tpu.memory_space<vmem>>, vector<1x2048x64xbf16>
    %232 = vector.shape_cast %231 : vector<1x2048x64xbf16> to vector<2048x64xbf16>
    %cst_148 = arith.constant dense<0.000000e+00> : vector<8x64xf32>
    %233 = tpu.matmul %230, %232, %cst_148 {dimension_numbers = #tpu.dot_dimension_numbers<[1], [0], [0], [1], [0, 0, 1, 1], [], []>} : vector<8x2048xbf16>, vector<2048x64xbf16>, vector<8x64xf32> -> vector<8x64xf32>
    %234 = vector.extract_strided_slice %5 {offsets = [3, 0], sizes = [1, 64], strides = [1, 1]} : vector<8x64xf32> to vector<1x64xf32>
    %235 = vector.broadcast %234 : vector<1x64xf32> to vector<8x64xf32>
    %236 = arith.addf %233, %235 : vector<8x64xf32>
    %237 = arith.addf %219, %236 : vector<8x64xf32>
    %238 = vector.extract_strided_slice %5 {offsets = [4, 0], sizes = [1, 64], strides = [1, 1]} : vector<8x64xf32> to vector<1x64xf32>
    %239 = vector.extract_strided_slice %5 {offsets = [5, 0], sizes = [1, 64], strides = [1, 1]} : vector<8x64xf32> to vector<1x64xf32>
    %cst_149 = arith.constant dense<0.000000e+00> : vector<8xf32>
    %240 = vector.multi_reduction <add>, %237, %cst_149 [1] : vector<8x64xf32> to vector<8xf32>
    %241 = vector.shape_cast %240 : vector<8xf32> to vector<8x1xf32>
    %cst_150 = arith.constant 6.400000e+01 : f32
    %242 = vector.broadcast %cst_150 : f32 to vector<8x1xf32>
    %243 = arith.divf %241, %242 : vector<8x1xf32>
    %244 = vector.broadcast %243 : vector<8x1xf32> to vector<8x64xf32>
    %245 = arith.subf %237, %244 : vector<8x64xf32>
    %246 = arith.mulf %245, %245 : vector<8x64xf32>
    %cst_151 = arith.constant dense<0.000000e+00> : vector<8xf32>
    %247 = vector.multi_reduction <add>, %246, %cst_151 [1] : vector<8x64xf32> to vector<8xf32>
    %248 = vector.shape_cast %247 : vector<8xf32> to vector<8x1xf32>
    %cst_152 = arith.constant 6.400000e+01 : f32
    %249 = vector.broadcast %cst_152 : f32 to vector<8x1xf32>
    %250 = arith.divf %248, %249 : vector<8x1xf32>
    %cst_153 = arith.constant 9.99999974E-6 : f32
    %251 = vector.broadcast %cst_153 : f32 to vector<8x1xf32>
    %252 = arith.addf %250, %251 : vector<8x1xf32>
    %253 = math.rsqrt %252 : vector<8x1xf32>
    %254 = vector.broadcast %253 : vector<8x1xf32> to vector<8x64xf32>
    %255 = arith.mulf %245, %254 : vector<8x64xf32>
    %256 = vector.broadcast %238 : vector<1x64xf32> to vector<8x64xf32>
    %257 = arith.mulf %255, %256 : vector<8x64xf32>
    %258 = vector.broadcast %239 : vector<1x64xf32> to vector<8x64xf32>
    %259 = arith.addf %257, %258 : vector<8x64xf32>
    %c0_154 = arith.constant 0 : index
    %c0_155 = arith.constant 0 : index
    %260 = vector.load %arg11[%c0_154, %c0_155] : memref<8x64xf32, #tpu.memory_space<vmem>>, vector<8x64xf32>
    tpu.vector_store %arg11[%c0_154, %c0_155], %259 {strides = array<i32>} : memref<8x64xf32, #tpu.memory_space<vmem>>, vector<8x64xf32>,
    %c1_i32 = arith.constant 1 : i32
    %261 = arith.cmpi eq, %arg1, %c1_i32 : i32
    %262 = arith.extui %261 : i1 to i32
    %c0_i32_156 = arith.constant 0 : i32
    %263 = arith.cmpi ne, %262, %c0_i32_156 : i32
    scf.if %263 {
      %c0_157 = arith.constant 0 : index
      %c0_158 = arith.constant 0 : index
      %c0_159 = arith.constant 0 : index
      %264 = vector.load %arg10[%c0_157, %c0_158, %c0_159] : memref<1x8x64xf32, #tpu.memory_space<vmem>>, vector<1x8x64xf32>
      %265 = vector.shape_cast %264 : vector<1x8x64xf32> to vector<8x64xf32>
      %266 = vector.shape_cast %259 : vector<8x64xf32> to vector<1x8x64xf32>
      tpu.vector_store %arg10[%c0_157, %c0_158, %c0_159], %266 {strides = array<i32>} : memref<1x8x64xf32, #tpu.memory_space<vmem>>, vector<1x8x64xf32>,
    } else {
    }
    return
  }
  func.func @transform_0(%arg0: i32, %arg1: i32) -> (i32, i32, i32) {
    %c0_i32 = arith.constant 0 : i32
    %c0_i32_0 = arith.constant 0 : i32
    %c0_i32_1 = arith.constant 0 : i32
    return %arg0, %c0_i32, %c0_i32_0 : i32, i32, i32
  }
  func.func @transform_1(%arg0: i32, %arg1: i32) -> (i32, i32, i32, i32) {
    %c0_i32 = arith.constant 0 : i32
    %c0_i32_0 = arith.constant 0 : i32
    %c0_i32_1 = arith.constant 0 : i32
    %c0_i32_2 = arith.constant 0 : i32
    return %arg1, %c0_i32, %c0_i32_0, %c0_i32_1 : i32, i32, i32, i32
  }
  func.func @transform_2(%arg0: i32, %arg1: i32) -> (i32, i32, i32) {
    %c0_i32 = arith.constant 0 : i32
    %c0_i32_0 = arith.constant 0 : i32
    %c0_i32_1 = arith.constant 0 : i32
    return %arg1, %c0_i32, %c0_i32_0 : i32, i32, i32
  }
  func.func @transform_3(%arg0: i32, %arg1: i32) -> (i32, i32, i32, i32) {
    %c0_i32 = arith.constant 0 : i32
    %c0_i32_0 = arith.constant 0 : i32
    %c0_i32_1 = arith.constant 0 : i32
    %c0_i32_2 = arith.constant 0 : i32
    return %arg1, %c0_i32, %c0_i32_0, %c0_i32_1 : i32, i32, i32, i32
  }
  func.func @transform_4(%arg0: i32, %arg1: i32) -> (i32, i32, i32) {
    %c0_i32 = arith.constant 0 : i32
    %c0_i32_0 = arith.constant 0 : i32
    %c0_i32_1 = arith.constant 0 : i32
    return %arg1, %c0_i32, %c0_i32_0 : i32, i32, i32
  }
  func.func @transform_5(%arg0: i32, %arg1: i32) -> (i32, i32, i32) {
    %c0_i32 = arith.constant 0 : i32
    %c0_i32_0 = arith.constant 0 : i32
    %c0_i32_1 = arith.constant 0 : i32
    return %arg1, %c0_i32, %c0_i32_0 : i32, i32, i32
  }
  func.func @transform_6(%arg0: i32, %arg1: i32) -> (i32, i32, i32) {
    %c0_i32 = arith.constant 0 : i32
    %c0_i32_0 = arith.constant 0 : i32
    %c0_i32_1 = arith.constant 0 : i32
    return %arg1, %c0_i32, %c0_i32_0 : i32, i32, i32
  }
  func.func @transform_7(%arg0: i32, %arg1: i32) -> (i32, i32, i32) {
    %c0_i32 = arith.constant 0 : i32
    %c0_i32_0 = arith.constant 0 : i32
    %c0_i32_1 = arith.constant 0 : i32
    return %arg1, %c0_i32, %c0_i32_0 : i32, i32, i32
  }
  func.func @transform_8(%arg0: i32, %arg1: i32) -> (i32, i32, i32) {
    %c0_i32 = arith.constant 0 : i32
    %c0_i32_0 = arith.constant 0 : i32
    %c0_i32_1 = arith.constant 0 : i32
    return %arg0, %c0_i32, %c0_i32_0 : i32, i32, i32
  }
}

</mosaic_0001>

<bundles_post_ra>
// kernel: char_transformer_forward.3
= control target key start
LH: loop header
LB: loop body
LE: loop exit
PB: predicated region body
PF: predicated region fallthrough
CT: control target
= control target key end

     0   :  { %s382_s12 = smov 0   ;;  %s414_s0 = inlined_call_operand.vmem [shape: f32[16,64], index: 0, kind: input, shape index: {}]   ;;  %s415_s1 = inlined_call_operand.vmem [shape: bf16[64,128], index: 1, kind: input, shape index: {}]   ;;  %s416_s2 = inlined_call_operand.vmem [shape: f32[1,128], index: 2, kind: input, shape index: {}]   ;;  %s417_s3 = inlined_call_operand.vmem [shape: f32[16,128], index: 3, kind: output, shape index: {}]  }
   0x1 LB: > { %s306_s13 = sadd.s32 4294967295, %s358_s12   ;;  %p310_p0 = scmp.ge.s32.totalorder %s358_s12, 1  ;;  %s358_s12 = sphi %s382_s12, %s13_s12  }
   0x2   : > { %p136_p1 = scmp.lt.s32.totalorder %s358_s12, 3 }
   0x4   : > { %p137_p2 = pnand %p310_p0, %p136_p1 }
   0x5   : > { %v348_v0 = vld [vmem:[%s415_s1] sm:$0xff] (!%p137_p2)   ;;  %v360_v1 = vmov (!%p137_p2), 0.0   ;;  %v349_v2 = vld [vmem:[%s415_s1 + $0x8] sm:$0xff] (!%p137_p2)   ;;  %vm361_vm0 = vmmov (!%p137_p2), 0   ;;  %p158_p3 = scmp.lt.s32.totalorder (!%p137_p2), %s306_s13, 1  ;;  %v350_v3 = vld [vmem:[%s415_s1 + $0x10] sm:$0xff] (!%p137_p2)  }
   0x6   : > { %140 = sbr.rel (%p137_p2) target bundleno = 237 (0xed), region = 32  ;;  %326 = vmatprep.subr.bf16.mxu0 (!%p137_p2), %v360_v1  ;;  %334 = vmatprep.mubr.msk.bf16.mxu0 (!%p137_p2), %vm361_vm0, %v360_v1  ;;  %v351_v4 = vld [vmem:[%s415_s1 + $0x18] sm:$0xff] (!%p137_p2)   ;;  %vm208_vm1 = vcmask (!%p137_p2), 523264   ;;  %v313_v7 = vld [vmem:[%s416_s2] ss:$0 sm:$0xff] (!%p137_p2) }
   0x7   : > { %327 = vmatpush3.bf16.msra.mxu0 (!%p137_p2), %v348_v0 }
   0x8   : > { %328 = vmatprep.subr.bf16.mxu0 (!%p137_p2), %v360_v1 }
   0xb   : > { %329 = vmatpush3.bf16.msra.mxu0 (!%p137_p2), %v349_v2 }
   0xc   : > { %330 = vmatprep.subr.bf16.mxu0 (!%p137_p2), %v360_v1 }
   0xd   : > { %s419_s13 = smov (!%p158_p3, %s306_s13), 1 }
   0xe   : > { %s311_s20 = sshll.u32 %s419_s13, 3 }
   0xf   : > { %s161_s23 = scalar_lea.vmem %s414_s0, %s311_s20  ;;  %331 = vmatpush3.bf16.msra.mxu0 %v350_v3  ;;  %s165_s30 = scalar_lea.vmem %s417_s3, %s311_s20 }
  0x10   : > { %v167_v5 = vld [vmem:[%s161_s23] sm:$0xff]  ;;  %332 = vmatprep.subr.bf16.mxu0 %v360_v1 }
  0x11   : > { %v176_v6 = vpack.c.bf16 %v167_v5, %v167_v5 }
  0x13   : > { %333 = vmatpush3.bf16.msra.mxu0 %v351_v4 }
  0x16   : > { %335 = vmatmul.mubr.msk.bf16.vlgmr.msra.gmra.mrb[0].mxu0 %vm208_vm1, %v176_v6 }
  0xe9   : > { %v246_v8 = vpop.f32.mrb[0].mxu0 }
  0xea   : > { %v247_v9 = vadd.f32 %v313_v7, %v246_v8  ;;  %v336_v10 = vpop.f32.mrb[1].mxu0 }
  0xeb   : > { %v249_v11 = vpop.f32.mrb[2].mxu0 }
  0xec   : > { %252 = vst [vmem:[%s165_s30] sm:$0xff] %v247_v9  ;;  %v337_v12 = vpop.f32.mrb[3].mxu0 }
  0xed PF: > { %s13_s12 = sadd.s32 1, %s358_s12  }
  0xee   : > { %p10_p4 = scmp.ge.s32.totalorder %s13_s12, 4  }
  0xf0   :  { %12 = sbr.rel (!%p10_p4) target bundleno = 1 (0x1), region = 62 }

// kernel: char_transformer_forward.2
= control target key start
LH: loop header
LB: loop body
LE: loop exit
PB: predicated region body
PF: predicated region fallthrough
CT: control target
= control target key end

     0   :  { %s5659_s27 = smov 0   ;;  %s5661_s28 = smov 0   ;;  %s6328_s0 = inlined_call_operand.vmem [shape: f32[2,8,64], index: 0, kind: input, shape index: {}]   ;;  %s6329_s1 = inlined_call_operand.vmem [shape: bf16[2,12,64,16], index: 1, kind: input, shape index: {}]   ;;  %s6330_s2 = inlined_call_operand.vmem [shape: f32[2,12,16], index: 2, kind: input, shape index: {}]   ;;  %s6331_s3 = inlined_call_operand.vmem [shape: bf16[2,4,16,64], index: 3, kind: input, shape index: {}]   ;;  %s6332_s4 = inlined_call_operand.vmem [shape: bf16[2,64,2048], index: 4, kind: input, shape index: {}]   ;;  %s6333_s5 = inlined_call_operand.vmem [shape: f32[2,1,2048], index: 5, kind: input, shape index: {}]   ;;  %s6334_s6 = inlined_call_operand.vmem [shape: bf16[2,2048,64], index: 6, kind: input, shape index: {}]   ;;  %s6335_s7 = inlined_call_operand.vmem [shape: f32[2,8,64], index: 7, kind: input, shape index: {}]   ;;  %s6336_s8 = inlined_call_operand.vmem [shape: f32[2,8,64], index: 8, kind: output, shape index: {}]  }
   0x1   :  { %6338 = sst [smem:[#allocation6_spill]] %s6328_s0  ;;  %s5663_s29 = smov 0  }
   0x2   :  { %6339 = sst [smem:[#allocation7_spill]] %s6329_s1  ;;  %s5665_s30 = smov 0  }
   0x3   :  { %6340 = sst [smem:[#allocation8_spill]] %s6330_s2  ;;  %s5667_s9 = smov 0  }
   0x4 LB: > { %6341 = sst [smem:[#allocation3_spill]] %s5604_s30  ;;  %s27_s10 = sadd.s32 1, %s5600_s29  ;;  %s5608_s9 = sphi %s5667_s9, %s18_s9   ;;  %s5604_s30 = sphi %s5665_s30, %s6349_s30   ;;  %s5600_s29 = sphi %s5663_s29, %s6351_s29   ;;  %s5596_s28 = sphi %s5661_s28, %s6347_s28   ;;  %s5592_s27 = sphi %s5659_s27, %s6350_s27  }
   0x5   : > { %s30_s11 = sadd.s32 1, %s5604_s30  ;;  %p28_p0 = scmp.ge.s32.totalorder %s27_s10, 2 }
   0x6   : > { %p4443_p1 = scmp.ge.s32.totalorder %s5608_s9, 1  ;;  %p341_p2 = scmp.lt.s32.totalorder %s5608_s9, 5 }
   0x7   : > { %s6353_s10 = smov (%p28_p0, %s27_s10), 0  ;;  %s6355_s11 = smov (!%p28_p0, %s30_s11), %s5604_s30 }
   0x8   : > { %6342 = sst [smem:[#allocation4_spill]] %s6353_s10  ;;  %p342_p3 = pnand %p4443_p1, %p341_p2 }
   0x9   : > { %p32_p4 = scmp.ge.s32.totalorder %s6355_s11, 2  ;;  %p406_p5 = scmp.lt.s32.totalorder (!%p342_p3), %s5596_s28, 1 }
   0xa   : > { %345 = sbr.rel (%p342_p3) target bundleno = 5135 (0x140f), region = 52  ;;  %p410_p6 = scmp.lt.s32.totalorder (!%p342_p3), %s5592_s27, 1 }
   0xb   : > { %s6357_s11 = smov (%p32_p4, %s6355_s11), 0  ;;  %s6344_s0 = sld [smem:[#allocation6_spill]] (!%p342_p3) }
   0xc   : > { %6343 = sst [smem:[#allocation5_spill]] %s6357_s11  ;;  %s6345_s1 = sld [smem:[#allocation7_spill]] (!%p342_p3) }
   0xd   : > { %s6346_s2 = sld [smem:[#allocation8_spill]] (!%p342_p3)  ;;  %p4457_p7 = scmp.ne.s32.totalorder (!%p342_p3), %s5592_s27, 0 }
  0x11   : > { %s6359_s28 = smov (!%p406_p5, %s5596_s28), 1  ;;  %vm453_vm0 = vcmask (!%p4457_p7), 523264  }
  0x12   : > { %s411_s12 = scalar_select %p410_p6, %s5592_s27, 1 }
  0x13   : > { %s4444_s13 = sshll.u32 %s6359_s28, 3 }
  0x14   : > { %s409_s16 = scalar_lea.vmem %s6344_s0, %s4444_s13  ;;  %s5323_s17 = smul.u32 384, %s411_s12 }
  0x15   : > { %s4843_s18 = sshll.u32 %s411_s12, 4  ;;  %s4844_s19 = sshll.u32 %s411_s12, 5  ;;  %v452_v0 = vld [vmem:[%s409_s16] sm:$0xff] (!%p4457_p7) }
  0x16   : > { %s5699_s22 = scalar_lea.vmem %s6345_s1, %s5323_s17  ;;  %s5704_s25 = scalar_lea.vmem %s6346_s2, %s4843_s18  ;;  %454 = vst.msk [vmem:[#allocation2] sm:$0xff] (!%p4457_p7), %vm453_vm0, %v452_v0 }
  0x17   : > { %s5709_s28 = scalar_lea.vmem %s6331_s3, %s4844_s19  ;;  %s4845_s14 = sshll.u32 %s411_s12, 9 }
  0x18   : > { %s5714_s10 = scalar_lea.vmem %s6332_s4, %s4845_s14  ;;  %s5719_s17 = scalar_lea.vmem %s6333_s5, %s4843_s18 }
  0x19   : > { %s4846_s21 = sshll.u32 %s411_s12, 10  ;;  %s4455_s23 = sshll.u32 %s411_s12, 3 }
  0x1a   : > { %s5724_s2 = scalar_lea.vmem %s6334_s6, %s4846_s21  ;;  %s5729_s26 = scalar_lea.vmem %s6335_s7, %s4455_s23 }
  0x1b   : > { %s5734_s15 = scalar_lea.vmem %s6336_s8, %s4444_s13  ;;  %451 = sbr.rel (%p4457_p7) target bundleno = 34 (0x22), region = 56 }
  0x22 PF: > { %v5368_v1 = vld [vmem:[%s5699_s22 + $0x80] sm:$0xff]   ;;  %v5610_v2 = vmov 0.0   ;;  %v5370_v4 = vld [vmem:[%s5699_s22 + $0x88] sm:$0xff]   ;;  %vm5611_vm1 = vmmov 0   ;;  %v5372_v6 = vld [vmem:[%s5699_s22 + $0x90] sm:$0xff]   ;;  %vm501_vm2 = vcmask 523264   ;;  %v457_v32 = vlaneseq }
  0x23   : > { %5119 = vmatprep.subr.bf16.mxu1 %v5610_v2  ;;  %5107 = vmatprep.subr.bf16.mxu0 %v5610_v2  ;;  %v5369_v3 = vld [vmem:[%s5699_s22] sm:$0xff]   ;;  %v5371_v5 = vld [vmem:[%s5699_s22 + $0x8] sm:$0xff]   ;;  %v5373_v7 = vld [vmem:[%s5699_s22 + $0x10] sm:$0xff]   ;;  %vm705_vm3 = vcmask 130048   ;;  %v5612_v35 = vmov -1e+30  }
  0x24   : > { %5120 = vmatpush3.bf16.msra.mxu1 %v5368_v1  ;;  %5127 = vmatprep.mubr.msk.bf16.mxu1 %vm5611_vm1, %v5610_v2  ;;  %v5374_v8 = vld [vmem:[%s5699_s22 + $0x98] sm:$0xff]   ;;  %v455_v9 = vld [vmem:[#allocation2] sm:$0xff]  ;;  %v5377_v29 = vld [vmem:[%s5699_s22 + $0x108] sm:$0xff]   ;;  %v5788_v33 = vshrl.u32 %v457_v32, 7  ;;  %v460_v34 = vand.u32 127, %v457_v32  ;;  %vm752_vm5 = vcmask 64512  }
  0x25   : > { %5108 = vmatpush3.bf16.msra.mxu0 %v5369_v3  ;;  %5121 = vmatprep.subr.bf16.mxu1 %v5610_v2  ;;  %v5375_v10 = vld [vmem:[%s5699_s22 + $0x18] sm:$0xff]   ;;  %v5757_v11 = vpack.c.bf16 %v455_v9, %v455_v9  ;;  %v4472_v12 = vld [vmem:[%s5704_s25 + $0x4] ss:$0 sm:$0xff]  ;;  %v4458_v13 = vld [vmem:[%s5704_s25] ss:$0 sm:$0xff]  ;;  %vm768_vm6 = vcmask 1043456  }
  0x26   : > { %5109 = vmatprep.subr.bf16.mxu0 %v5610_v2  ;;  %5115 = vmatprep.mubr.msk.bf16.mxu0 %vm5611_vm1, %v5610_v2  ;;  %v5376_v28 = vld [vmem:[%s5699_s22 + $0x100] sm:$0xff]   ;;  %v5378_v30 = vld [vmem:[%s5699_s22 + $0x110] sm:$0xff]   ;;  %v5379_v31 = vld [vmem:[%s5699_s22 + $0x118] sm:$0xff]   ;;  %vm461_vm4 = vcmp.le.s32.totalorder %v460_v34, %v5788_v33  ;;  %p4840_p8 = scmp.ne.s32.totalorder %s5592_s27, 1 }
  0x27   : > { %v5791_v36 = vsel %vm461_vm4, 0.0, %v5612_v35  ;;  %v4486_v51 = vld [vmem:[%s5704_s25 + $0x8] ss:$0 sm:$0xff]  ;;  %v5381_v56 = vld [vmem:[%s5699_s22 + $0x20] sm:$0xff]   ;;  %v5385_v58 = vld [vmem:[%s5699_s22 + $0x30] sm:$0xff]  }
  0x28   : > { %5122 = vmatpush3.bf16.msra.mxu1 %v5370_v4  ;;  %v5383_v57 = vld [vmem:[%s5699_s22 + $0x28] sm:$0xff]   ;;  %v5387_v59 = vld [vmem:[%s5699_s22 + $0x38] sm:$0xff]   ;;  %v5380_v63 = vld [vmem:[%s5699_s22 + $0xa0] sm:$0xff]  }
  0x29   : > { %5110 = vmatpush3.bf16.msra.mxu0 %v5371_v5  ;;  %5123 = vmatprep.subr.bf16.mxu1 %v5610_v2  ;;  %v5382_v1 = vld [vmem:[%s5699_s22 + $0xa8] sm:$0xff]   ;;  %v5384_v3 = vld [vmem:[%s5699_s22 + $0xb0] sm:$0xff]   ;;  %v5386_v4 = vld [vmem:[%s5699_s22 + $0xb8] sm:$0xff]  }
  0x2a   : > { %5111 = vmatprep.subr.bf16.mxu0 %v5610_v2 }
  0x2c   : > { %5124 = vmatpush3.bf16.msra.mxu1 %v5372_v6 }
  0x2d   : > { %5112 = vmatpush3.bf16.msra.mxu0 %v5373_v7  ;;  %5125 = vmatprep.subr.bf16.mxu1 %v5610_v2 }
  0x2e   : > { %5113 = vmatprep.subr.bf16.mxu0 %v5610_v2 }
  0x30   : > { %5126 = vmatpush3.bf16.msra.mxu1 %v5374_v8 }
  0x31   : > { %5114 = vmatpush3.bf16.msra.mxu0 %v5375_v10  ;;  %5143 = vmatprep.subr.bf16.mxu1 %v5610_v2 }
  0x32   : > { %5131 = vmatprep.subr.bf16.mxu0 %v5610_v2 }
  0x33   : > { %5128 = vmatmul.mubr.msk.bf16.vlgmr.msra.gmra.mrb[0].mxu1 %vm501_vm2, %v5757_v11 }
  0x34   : > { %5116 = vmatmul.mubr.msk.bf16.vlgmr.msra.gmra.mrb[0].mxu0 %vm501_vm2, %v5757_v11  ;;  %5145 = vmatprep.mubr.msk.bf16.mxu1 %vm5611_vm1, %v5610_v2 }
  0x35   : > { %5139 = vmatprep.mubr.msk.bf16.mxu0 %vm5611_vm1, %v5610_v2  ;;  %5132 = vmatpush3.bf16.msra.mxu0 %v5376_v28  ;;  %v5390_v28 = vld [vmem:[%s5699_s22 + $0x130] sm:$0xff]  }
  0x36   : > { %5133 = vmatprep.subr.bf16.mxu0 %v5610_v2 }
  0x39   : > { %5134 = vmatpush3.bf16.msra.mxu0 %v5377_v29  ;;  %v5391_v29 = vld [vmem:[%s5699_s22 + $0x138] sm:$0xff]  }
  0x3a   : > { %5135 = vmatprep.subr.bf16.mxu0 %v5610_v2 }
  0x3d   : > { %5136 = vmatpush3.bf16.msra.mxu0 %v5378_v30 }
  0x3e   : > { %5137 = vmatprep.subr.bf16.mxu0 %v5610_v2 }
  0x41   : > { %5138 = vmatpush3.bf16.msra.mxu0 %v5379_v31 }
  0x42   : > { %5155 = vmatprep.subr.bf16.mxu0 %v5610_v2 }
  0x44   : > { %5140 = vmatmul.mubr.msk.bf16.vlgmr.msra.gmra.mrb[4].mxu0 %vm501_vm2, %v5757_v11 }
  0x45   : > { %5163 = vmatprep.mubr.msk.bf16.mxu0 %vm5611_vm1, %v5610_v2  ;;  %5156 = vmatpush3.bf16.msra.mxu0 %v5381_v56 }
  0x46   : > { %5157 = vmatprep.subr.bf16.mxu0 %v5610_v2 }
  0x49   : > { %5158 = vmatpush3.bf16.msra.mxu0 %v5383_v57  ;;  %v5393_v57 = vld [vmem:[%s5699_s22 + $0xc0] sm:$0xff]  }
  0x4a   : > { %5159 = vmatprep.subr.bf16.mxu0 %v5610_v2 }
  0x4d   : > { %5160 = vmatpush3.bf16.msra.mxu0 %v5385_v58 }
  0x4e   : > { %5161 = vmatprep.subr.bf16.mxu0 %v5610_v2 }
  0x51   : > { %5162 = vmatpush3.bf16.msra.mxu0 %v5387_v59  ;;  %v5395_v59 = vld [vmem:[%s5699_s22 + $0xc8] sm:$0xff]  }
  0x52   : > { %5179 = vmatprep.subr.bf16.mxu0 %v5610_v2 }
  0x54   : > { %5164 = vmatmul.mubr.msk.bf16.vlgmr.msra.gmra.mrb[8].mxu0 %vm501_vm2, %v5757_v11 }
  0x55   : > { %5187 = vmatprep.mubr.msk.bf16.mxu0 %vm5611_vm1, %v5610_v2 }
 0x106   : > { %v619_v14 = vpop.f32.mrb[0].mxu1 }
 0x107   : > { %v620_v15 = vadd.f32 %v4472_v12, %v619_v14  ;;  %v5129_v16 = vpop.f32.mrb[1].mxu1  ;;  %v539_v17 = vpop.f32.mrb[0].mxu0  ;;  %v4516_v14 = vld [vmem:[%s5704_s25 + $0x5] ss:$0 sm:$0xff] }
 0x108   : > { %v622_v18 = vpop.f32.mrb[2].mxu1  ;;  %v540_v19 = vadd.f32 %v4458_v13, %v539_v17  ;;  %v5117_v20 = vpop.f32.mrb[1].mxu0 }
 0x109   : > { %v625_v21 = vpack.c.bf16 %v620_v15, %v620_v15  ;;  %v5130_v22 = vpop.f32.mrb[3].mxu1  ;;  %v542_v23 = vpop.f32.mrb[2].mxu0  ;;  %v4502_v15 = vld [vmem:[%s5704_s25 + $0x1] ss:$0 sm:$0xff] }
 0x10a   : > { %v5118_v24 = vpop.f32.mrb[3].mxu0  ;;  %v545_v26 = vmul.f32 0.25, %v540_v19 }
 0x10b   : > { %v710_v25 = vsel %vm705_vm3, %v625_v21, 0 }
 0x10c   : > { %5144 = vmatpush3.bf16.xpose.msra.mxu1 %v710_v25  ;;  %v546_v27 = vpack.c.bf16 %v545_v26, %v545_v26  ;;  %v5388_v26 = vld [vmem:[%s5699_s22 + $0x120] sm:$0xff]  }
 0x10d   : > { %5149 = vmatprep.subr.bf16.mxu1 %v5610_v2  ;;  %5180 = vmatpush3.bf16.msra.mxu0 %v5388_v26  ;;  %v4552_v26 = vld [vmem:[%s5704_s25 + $0x2] ss:$0 sm:$0xff] }
 0x10e   : > { %5181 = vmatprep.subr.bf16.mxu0 %v5610_v2 }
 0x113   : > { %5146 = vmatmul.mubr.msk.bf16.vlgmr.msra.gmra.mrb[4].mxu1 %vm705_vm3, %v546_v27  ;;  %v5389_v27 = vld [vmem:[%s5699_s22 + $0x128] sm:$0xff]  }
 0x114   : > { %5151 = vmatprep.mubr.msk.bf16.mxu1 %vm5611_vm1, %v5610_v2  ;;  %5182 = vmatpush3.bf16.msra.mxu0 %v5389_v27 }
 0x115   : > { %5183 = vmatprep.subr.bf16.mxu0 %v5610_v2 }
 0x117   : > { %v698_v48 = vpop.f32.mrb[4].mxu0 }
 0x118   : > { %v5141_v49 = vpop.f32.mrb[5].mxu0  ;;  %v699_v53 = vadd.f32 %v4486_v51, %v698_v48  ;;  %5184 = vmatpush3.bf16.msra.mxu0 %v5390_v28  ;;  %v5394_v51 = vld [vmem:[%s5709_s28 + $0x8] sm:$0xff]  }
 0x119   : > { %v701_v50 = vpop.f32.mrb[6].mxu0  ;;  %5185 = vmatprep.subr.bf16.mxu0 %v5610_v2 }
 0x11a   : > { %v5142_v52 = vpop.f32.mrb[7].mxu0  ;;  %v704_v54 = vpack.c.bf16 %v699_v53, %v699_v53 }
 0x11c   : > { %v770_v55 = vsel %vm768_vm6, %v704_v54, 0  ;;  %5186 = vmatpush3.bf16.msra.mxu0 %v5391_v29 }
 0x11d   : > { %5150 = vmatpush3.bf16.msra.mxu1 %v770_v55  ;;  %5203 = vmatprep.subr.bf16.mxu0 %v5610_v2  ;;  %v5392_v55 = vld [vmem:[%s5709_s28] sm:$0xff]  }
 0x11e   : > { %5167 = vmatprep.subr.bf16.mxu1 %v5610_v2 }
 0x11f   : > { %5188 = vmatmul.mubr.msk.bf16.vlgmr.msra.gmra.mrb[12].mxu0 %vm501_vm2, %v5757_v11 }
 0x120   : > { %5205 = vmatprep.mubr.msk.bf16.mxu0 %vm5611_vm1, %v5610_v2  ;;  %5204 = vmatpush3.bf16.msra.mxu0 %v5394_v51 }
 0x121   : > { %5215 = vmatprep.subr.bf16.mxu0 %v5610_v2 }
 0x127   : > { %v887_v5 = vpop.f32.mrb[8].mxu0 }
 0x128   : > { %v5165_v6 = vpop.f32.mrb[9].mxu0  ;;  %v888_v19 = vadd.f32 %v4502_v15, %v887_v5  ;;  %v5399_v5 = vld [vmem:[%s5699_s22 + $0x48] sm:$0xff]  }
 0x129   : > { %v890_v7 = vpop.f32.mrb[10].mxu0 }
 0x12a   : > { %v5166_v8 = vpop.f32.mrb[11].mxu0  ;;  %v893_v24 = vmul.f32 0.25, %v888_v19  ;;  %v5400_v7 = vld [vmem:[%s5699_s22 + $0x50] sm:$0xff]  }
 0x12c   : > { %v894_v25 = vpack.c.bf16 %v893_v24, %v893_v24 }
 0x1e6   : > { %v746_v37 = vpop.f32.mrb[4].mxu1 }
 0x1e7   : > { %v747_v38 = vadd.f32 %v746_v37, %v5791_v36  ;;  %v5147_v39 = vpop.f32.mrb[5].mxu1 }
 0x1e8   : > { %v749_v40 = vpop.f32.mrb[6].mxu1 }
 0x1e9   : > { %v5148_v41 = vpop.f32.mrb[7].mxu1  ;;  %v753_v42 = vsel %vm752_vm5, %v747_v38, -inf }
 0x1ea   : > { %754 = vmax.xlane.f32.xlu0 %v753_v42 }
 0x277   : > { %v755_v43 = vpop.xlane.xlu0 %754 }
 0x278   : > { %v756_v44 = vsub.f32 %v747_v38, %v755_v43  ;;  %v1046_v43 = vpop.f32.mrb[12].mxu0 }
 0x27a   : > { %v757_v45 = vmul.f32 1.442695, %v756_v44  ;;  %v5189_v44 = vpop.f32.mrb[13].mxu0 }
 0x27c   : > { %5548 = vpow2.f32 %v757_v45  ;;  %v1049_v45 = vpop.f32.mrb[14].mxu0 }
 0x286   : > { %v5549_v46 = vpop.eup %5548 }
 0x287   : > { %v759_v47 = vsel %vm752_vm5, %v5549_v46, 0.0 }
 0x288   : > { %760 = vadd.xlane.f32.xlu0 %v759_v47  ;;  %v5190_v47 = vpop.f32.mrb[15].mxu0 }
 0x315   : > { %v761_v60 = vpop.xlane.xlu0 %760 }
 0x316   : > { %5550 = vrcp.f32 %v761_v60  ;;  %v5396_v60 = vld [vmem:[%s5699_s22 + $0xd0] sm:$0xff]  }
 0x320   : > { %v5551_v61 = vpop.eup %5550 }
 0x321   : > { %v763_v62 = vmul.f32 %v5551_v61, %v5549_v46  ;;  %v4530_v46 = vld [vmem:[%s5704_s25 + $0x9] ss:$0 sm:$0xff]  ;;  %v5398_v61 = vld [vmem:[%s5699_s22 + $0xd8] sm:$0xff]  }
 0x322   : > { %v1047_v48 = vadd.f32 %v4530_v46, %v1046_v43 }
 0x323   : > { %v764_v0 = vpack.c.bf16 %v763_v62, %v763_v62 }
 0x324   : > { %v1052_v49 = vpack.c.bf16 %v1047_v48, %v1047_v48 }
 0x325   : > { %5152 = vmatmul.mubr.msk.bf16.vlgmr.msra.gmra.mrb[8].mxu1 %vm752_vm5, %v764_v0 }
 0x326   : > { %5168 = vmatpush3.bf16.msra.mxu1 %v5380_v63  ;;  %5175 = vmatprep.mubr.msk.bf16.mxu1 %vm5611_vm1, %v5610_v2  ;;  %v1115_v50 = vsel %vm768_vm6, %v1052_v49, 0  ;;  %v5397_v63 = vld [vmem:[%s5699_s22 + $0x40] sm:$0xff]  }
 0x327   : > { %5169 = vmatprep.subr.bf16.mxu1 %v5610_v2 }
 0x32a   : > { %5170 = vmatpush3.bf16.msra.mxu1 %v5382_v1 }
 0x32b   : > { %5171 = vmatprep.subr.bf16.mxu1 %v5610_v2 }
 0x32e   : > { %5172 = vmatpush3.bf16.msra.mxu1 %v5384_v3 }
 0x32f   : > { %5173 = vmatprep.subr.bf16.mxu1 %v5610_v2 }
 0x332   : > { %5174 = vmatpush3.bf16.msra.mxu1 %v5386_v4 }
 0x333   : > { %5191 = vmatprep.subr.bf16.mxu1 %v5610_v2 }
 0x335   : > { %5176 = vmatmul.mubr.msk.bf16.vlgmr.msra.gmra.mrb[12].mxu1 %vm501_vm2, %v5757_v11 }
 0x336   : > { %5193 = vmatprep.mubr.msk.bf16.mxu1 %vm5611_vm1, %v5610_v2 }
 0x3f8   : > { %v5826_v9 = vpop.f32.mrb[8].mxu1 }
 0x3f9   : > { %v5153_v10 = vpop.f32.mrb[9].mxu1  ;;  %v814_v58 = vpack.c.bf16 %v5826_v9, %v5826_v9 }
 0x3fa   : > { %v809_v12 = vpop.f32.mrb[10].mxu1 }
 0x3fb   : > { %v5154_v13 = vpop.f32.mrb[11].mxu1  ;;  %v5401_v12 = vld [vmem:[%s5699_s22 + $0x58] sm:$0xff]  }
 0x3fc   : > { %v4566_v13 = vld [vmem:[%s5704_s25 + $0x6] ss:$0 sm:$0xff] }
 0x408   : > { %v967_v16 = vpop.f32.mrb[12].mxu1 }
 0x409   : > { %v968_v17 = vadd.f32 %v4516_v14, %v967_v16  ;;  %v5177_v18 = vpop.f32.mrb[13].mxu1 }
 0x40a   : > { %v970_v20 = vpop.f32.mrb[14].mxu1 }
 0x40b   : > { %v973_v21 = vpack.c.bf16 %v968_v17, %v968_v17  ;;  %v5178_v22 = vpop.f32.mrb[15].mxu1 }
 0x40d   : > { %v1057_v23 = vsel %vm705_vm3, %v973_v21, 0 }
 0x40e   : > { %5192 = vmatpush3.bf16.xpose.msra.mxu1 %v1057_v23 }
 0x40f   : > { %5197 = vmatprep.subr.bf16.mxu1 %v5610_v2 }
 0x415   : > { %5194 = vmatmul.mubr.msk.bf16.vlgmr.msra.gmra.mrb[16].mxu1 %vm705_vm3, %v894_v25 }
 0x416   : > { %5199 = vmatprep.mubr.msk.bf16.mxu1 %vm5611_vm1, %v5610_v2  ;;  %5198 = vmatpush3.bf16.msra.mxu1 %v1115_v50 }
 0x417   : > { %5209 = vmatprep.subr.bf16.mxu1 %v5610_v2 }
 0x4e8   : > { %v1093_v30 = vpop.f32.mrb[16].mxu1 }
 0x4e9   : > { %v1094_v31 = vadd.f32 %v1093_v30, %v5791_v36  ;;  %v5195_v32 = vpop.f32.mrb[17].mxu1 }
 0x4ea   : > { %v1096_v34 = vpop.f32.mrb[18].mxu1 }
 0x4eb   : > { %v5196_v35 = vpop.f32.mrb[19].mxu1  ;;  %v1099_v37 = vsel %vm752_vm5, %v1094_v31, -inf }
 0x4ec   : > { %1100 = vmax.xlane.f32.xlu1 %v1099_v37  ;;  %v5402_v35 = vld [vmem:[%s5699_s22 + $0x140] sm:$0xff]   ;;  %v5403_v37 = vld [vmem:[%s5699_s22 + $0x148] sm:$0xff]  }
 0x579   : > { %v1101_v38 = vpop.xlane.xlu1 %1100 }
 0x57a   : > { %v1102_v39 = vsub.f32 %v1094_v31, %v1101_v38  ;;  %v5404_v38 = vld [vmem:[%s5699_s22 + $0x150] sm:$0xff]  }
 0x57c   : > { %v1103_v40 = vmul.f32 1.442695, %v1102_v39  ;;  %v5405_v39 = vld [vmem:[%s5699_s22 + $0x158] sm:$0xff]  }
 0x57e   : > { %5552 = vpow2.f32 %v1103_v40 }
 0x588   : > { %v5553_v41 = vpop.eup %5552 }
 0x589   : > { %v1105_v42 = vsel %vm752_vm5, %v5553_v41, 0.0 }
 0x58a   : > { %1106 = vadd.xlane.f32.xlu1 %v1105_v42 }
 0x617   : > { %v1107_v52 = vpop.xlane.xlu1 %1106 }
 0x618   : > { %5554 = vrcp.f32 %v1107_v52 }
 0x622   : > { %v5555_v53 = vpop.eup %5554 }
 0x623   : > { %v1109_v54 = vmul.f32 %v5555_v53, %v5553_v41 }
 0x625   : > { %v1110_v56 = vpack.c.bf16 %v1109_v54, %v1109_v54  ;;  %v4580_v54 = vld [vmem:[%s5704_s25 + $0xa] ss:$0 sm:$0xff] }
 0x627   : > { %5200 = vmatmul.mubr.msk.bf16.vlgmr.msra.gmra.mrb[20].mxu1 %vm752_vm5, %v1110_v56 }
 0x628   : > { %5210 = vmatpush3.bf16.msra.mxu1 %v5392_v55  ;;  %5211 = vmatprep.mubr.msk.bf16.mxu1 %vm5611_vm1, %v5610_v2 }
 0x629   : > { %5227 = vmatprep.subr.bf16.mxu1 %v5610_v2 }
 0x62f   : > { %5212 = vmatmul.mubr.msk.bf16.vlgmr.msra.gmra.mrb[24].mxu1 %vm705_vm3, %v814_v58 }
 0x630   : > { %5228 = vmatpush3.bf16.msra.mxu1 %v5393_v57  ;;  %5235 = vmatprep.mubr.msk.bf16.mxu1 %vm5611_vm1, %v5610_v2 }
 0x631   : > { %5229 = vmatprep.subr.bf16.mxu1 %v5610_v2 }
 0x634   : > { %5230 = vmatpush3.bf16.msra.mxu1 %v5395_v59  ;;  %v5406_v59 = vld [vmem:[%s5709_s28 + $0x10] sm:$0xff]  }
 0x635   : > { %5231 = vmatprep.subr.bf16.mxu1 %v5610_v2 }
 0x638   : > { %5232 = vmatpush3.bf16.msra.mxu1 %v5396_v60 }
 0x639   : > { %5233 = vmatprep.subr.bf16.mxu1 %v5610_v2 }
 0x63c   : > { %5234 = vmatpush3.bf16.msra.mxu1 %v5398_v61 }
 0x63d   : > { %5251 = vmatprep.subr.bf16.mxu1 %v5610_v2 }
 0x63f   : > { %5236 = vmatmul.mubr.msk.bf16.vlgmr.msra.gmra.mrb[28].mxu1 %vm501_vm2, %v5757_v11 }
 0x640   : > { %5253 = vmatprep.mubr.msk.bf16.mxu1 %vm5611_vm1, %v5610_v2 }
 0x6fa   : > { %v1151_v62 = vpop.f32.mrb[20].mxu1 }
 0x6fb   : > { %v1160_v0 = vpack.c.bf16 %v1151_v62, %v1151_v62  ;;  %v5201_v1 = vpop.f32.mrb[21].mxu1 }
 0x6fc   : > { %v1154_v3 = vpop.f32.mrb[22].mxu1  ;;  %v5410_v1 = vld [vmem:[%s5699_s22 + $0x68] sm:$0xff]  }
 0x6fd   : > { %v5202_v4 = vpop.f32.mrb[23].mxu1  ;;  %5206 = vmatmul.mubr.msk.bf16.vlgmr.msra.gmra.mrb[16].mxu0 %vm705_vm3, %v1160_v0  ;;  %v5408_v0 = vld [vmem:[%s5699_s22 + $0x60] sm:$0xff]   ;;  %v5412_v3 = vld [vmem:[%s5699_s22 + $0x70] sm:$0xff]  }
 0x6fe   : > { %5216 = vmatpush3.bf16.msra.mxu0 %v5397_v63  ;;  %5223 = vmatprep.mubr.msk.bf16.mxu0 %vm5611_vm1, %v5610_v2  ;;  %v5414_v4 = vld [vmem:[%s5699_s22 + $0x78] sm:$0xff]  }
 0x6ff   : > { %5217 = vmatprep.subr.bf16.mxu0 %v5610_v2 }
 0x702   : > { %5218 = vmatpush3.bf16.msra.mxu0 %v5399_v5  ;;  %v1253_v6 = vpop.f32.mrb[24].mxu1 }
 0x703   : > { %v5213_v8 = vpop.f32.mrb[25].mxu1  ;;  %5219 = vmatprep.subr.bf16.mxu0 %v5610_v2 }
 0x704   : > { %v1256_v9 = vpop.f32.mrb[26].mxu1 }
 0x705   : > { %v5214_v10 = vpop.f32.mrb[27].mxu1 }
 0x706   : > { %5220 = vmatpush3.bf16.msra.mxu0 %v5400_v7 }
 0x707   : > { %5221 = vmatprep.subr.bf16.mxu0 %v5610_v2 }
 0x70a   : > { %5222 = vmatpush3.bf16.msra.mxu0 %v5401_v12  ;;  %v5409_v12 = vld [vmem:[%s5699_s22 + $0xe8] sm:$0xff]  }
 0x70b   : > { %5239 = vmatprep.subr.bf16.mxu0 %v5610_v2 }
 0x70d   : > { %5224 = vmatmul.mubr.msk.bf16.vlgmr.msra.gmra.mrb[20].mxu0 %vm501_vm2, %v5757_v11 }
 0x70e   : > { %5247 = vmatprep.mubr.msk.bf16.mxu0 %vm5611_vm1, %v5610_v2  ;;  %5240 = vmatpush3.bf16.msra.mxu0 %v5402_v35 }
 0x70f   : > { %5241 = vmatprep.subr.bf16.mxu0 %v5610_v2 }
 0x712   : > { %v1411_v14 = vpop.f32.mrb[28].mxu1  ;;  %5242 = vmatpush3.bf16.msra.mxu0 %v5403_v37 }
 0x713   : > { %v1412_v15 = vadd.f32 %v4566_v13, %v1411_v14  ;;  %v5237_v16 = vpop.f32.mrb[29].mxu1  ;;  %5243 = vmatprep.subr.bf16.mxu0 %v5610_v2  ;;  %v5411_v13 = vld [vmem:[%s5699_s22 + $0xf0] sm:$0xff]   ;;  %v5413_v14 = vld [vmem:[%s5699_s22 + $0xf8] sm:$0xff]  }
 0x714   : > { %v1414_v17 = vpop.f32.mrb[30].mxu1 }
 0x715   : > { %v1417_v18 = vpack.c.bf16 %v1412_v15, %v1412_v15  ;;  %v5238_v19 = vpop.f32.mrb[31].mxu1 }
 0x716   : > { %5244 = vmatpush3.bf16.msra.mxu0 %v5404_v38  ;;  %v5415_v38 = vld [vmem:[%s5699_s22 + $0x160] sm:$0xff]  }
 0x717   : > { %v1501_v20 = vsel %vm705_vm3, %v1417_v18, 0  ;;  %5245 = vmatprep.subr.bf16.mxu0 %v5610_v2 }
 0x718   : > { %5252 = vmatpush3.bf16.xpose.msra.mxu1 %v1501_v20 }
 0x719   : > { %5257 = vmatprep.subr.bf16.mxu1 %v5610_v2 }
 0x71a   : > { %5246 = vmatpush3.bf16.msra.mxu0 %v5405_v39  ;;  %v5416_v39 = vld [vmem:[%s5699_s22 + $0x168] sm:$0xff]  }
 0x71b   : > { %5263 = vmatprep.subr.bf16.mxu0 %v5610_v2 }
 0x71d   : > { %5248 = vmatmul.mubr.msk.bf16.vlgmr.msra.gmra.mrb[24].mxu0 %vm501_vm2, %v5757_v11 }
 0x71e   : > { %5265 = vmatprep.mubr.msk.bf16.mxu0 %vm5611_vm1, %v5610_v2  ;;  %5264 = vmatpush3.bf16.msra.mxu0 %v5406_v59 }
 0x71f   : > { %5281 = vmatprep.subr.bf16.mxu0 %v5610_v2 }
 0x7d0   : > { %v1204_v21 = vpop.f32.mrb[16].mxu0 }
 0x7d1   : > { %v5895_v22 = vadd.f32 %v1253_v6, %v1204_v21  ;;  %v5207_v23 = vpop.f32.mrb[17].mxu0  ;;  %v5407_v6 = vld [vmem:[%s5699_s22 + $0xe0] sm:$0xff]  }
 0x7d2   : > { %v1207_v24 = vpop.f32.mrb[18].mxu0 }
 0x7d3   : > { %v5208_v25 = vpop.f32.mrb[19].mxu0 }
 0x7d4   : > { %v4614_v25 = vld [vmem:[%s5704_s25 + $0x7] ss:$0 sm:$0xff] }
 0x7e0   : > { %v1331_v27 = vpop.f32.mrb[20].mxu0 }
 0x7e1   : > { %v1332_v28 = vadd.f32 %v4552_v26, %v1331_v27  ;;  %v5225_v29 = vpop.f32.mrb[21].mxu0  ;;  %v4600_v26 = vld [vmem:[%s5704_s25 + $0x3] ss:$0 sm:$0xff] }
 0x7e2   : > { %v1334_v30 = vpop.f32.mrb[22].mxu0 }
 0x7e3   : > { %v1337_v31 = vmul.f32 0.25, %v1332_v28  ;;  %v5226_v32 = vpop.f32.mrb[23].mxu0 }
 0x7e5   : > { %v1338_v34 = vpack.c.bf16 %v1337_v31, %v1337_v31 }
 0x7e7   : > { %5254 = vmatmul.mubr.msk.bf16.vlgmr.msra.gmra.mrb[32].mxu1 %vm705_vm3, %v1338_v34 }
 0x7e8   : > { %5259 = vmatprep.mubr.msk.bf16.mxu1 %vm5611_vm1, %v5610_v2 }
 0x7f0   : > { %v1490_v51 = vpop.f32.mrb[24].mxu0 }
 0x7f1   : > { %v5249_v52 = vpop.f32.mrb[25].mxu0  ;;  %v1491_v56 = vadd.f32 %v4580_v54, %v1490_v51 }
 0x7f2   : > { %v1493_v53 = vpop.f32.mrb[26].mxu0 }
 0x7f3   : > { %v5250_v55 = vpop.f32.mrb[27].mxu0  ;;  %v1496_v57 = vpack.c.bf16 %v1491_v56, %v1491_v56 }
 0x7f5   : > { %v1559_v58 = vsel %vm768_vm6, %v1496_v57, 0 }
 0x7f6   : > { %5258 = vmatpush3.bf16.msra.mxu1 %v1559_v58  ;;  %v5419_v58 = vld [vmem:[%s5709_s28 + $0x18] sm:$0xff]  }
 0x7f7   : > { %5269 = vmatprep.subr.bf16.mxu1 %v5610_v2 }
 0x8ba   : > { %v1537_v40 = vpop.f32.mrb[32].mxu1 }
 0x8bb   : > { %v1538_v41 = vadd.f32 %v1537_v40, %v5791_v36  ;;  %v5255_v42 = vpop.f32.mrb[33].mxu1  ;;  %v5417_v40 = vld [vmem:[%s5699_s22 + $0x170] sm:$0xff]  }
 0x8bc   : > { %v1540_v43 = vpop.f32.mrb[34].mxu1 }
 0x8bd   : > { %v5256_v44 = vpop.f32.mrb[35].mxu1  ;;  %v1543_v45 = vsel %vm752_vm5, %v1538_v41, -inf }
 0x8be   : > { %1544 = vmax.xlane.f32.xlu0 %v1543_v45 }
 0x94b   : > { %v1545_v46 = vpop.xlane.xlu0 %1544 }
 0x94c   : > { %v1546_v47 = vsub.f32 %v1538_v41, %v1545_v46  ;;  %v5418_v41 = vld [vmem:[%s5699_s22 + $0x178] sm:$0xff]  }
 0x94e   : > { %v1547_v48 = vmul.f32 1.442695, %v1546_v47 }
 0x950   : > { %5556 = vpow2.f32 %v1547_v48  ;;  %v4628_v48 = vld [vmem:[%s5704_s25 + $0xb] ss:$0 sm:$0xff] }
 0x95a   : > { %v5557_v49 = vpop.eup %5556 }
 0x95b   : > { %v1549_v50 = vsel %vm752_vm5, %v5557_v49, 0.0 }
 0x95c   : > { %1550 = vadd.xlane.f32.xlu1 %v1549_v50 }
 0x9e9   : > { %v1551_v60 = vpop.xlane.xlu1 %1550 }
 0x9ea   : > { %5558 = vrcp.f32 %v1551_v60 }
 0x9f4   : > { %v5559_v61 = vpop.eup %5558 }
 0x9f5   : > { %v1553_v62 = vmul.f32 %v5559_v61, %v5557_v49 }
 0x9f7   : > { %v1554_v63 = vpack.c.bf16 %v1553_v62, %v1553_v62 }
 0x9f9   : > { %5260 = vmatmul.mubr.msk.bf16.vlgmr.msra.gmra.mrb[36].mxu1 %vm752_vm5, %v1554_v63 }
 0x9fa   : > { %5277 = vmatprep.mubr.msk.bf16.mxu1 %vm5611_vm1, %v5610_v2  ;;  %5270 = vmatpush3.bf16.msra.mxu1 %v5408_v0 }
 0x9fb   : > { %5271 = vmatprep.subr.bf16.mxu1 %v5610_v2 }
 0x9fe   : > { %5272 = vmatpush3.bf16.msra.mxu1 %v5410_v1 }
 0x9ff   : > { %5273 = vmatprep.subr.bf16.mxu1 %v5610_v2 }
 0xa02   : > { %5274 = vmatpush3.bf16.msra.mxu1 %v5412_v3 }
 0xa03   : > { %5275 = vmatprep.subr.bf16.mxu1 %v5610_v2 }
 0xa06   : > { %5276 = vmatpush3.bf16.msra.mxu1 %v5414_v4 }
 0xa07   : > { %5293 = vmatprep.subr.bf16.mxu1 %v5610_v2 }
 0xa09   : > { %5278 = vmatmul.mubr.msk.bf16.vlgmr.msra.gmra.mrb[40].mxu1 %vm501_vm2, %v5757_v11 }
 0xa0a   : > { %5301 = vmatprep.mubr.msk.bf16.mxu1 %vm5611_vm1, %v5610_v2  ;;  %5294 = vmatpush3.bf16.msra.mxu1 %v5415_v38 }
 0xa0b   : > { %5295 = vmatprep.subr.bf16.mxu1 %v5610_v2 }
 0xa0e   : > { %5296 = vmatpush3.bf16.msra.mxu1 %v5416_v39 }
 0xa0f   : > { %5297 = vmatprep.subr.bf16.mxu1 %v5610_v2 }
 0xa12   : > { %5298 = vmatpush3.bf16.msra.mxu1 %v5417_v40 }
 0xa13   : > { %5299 = vmatprep.subr.bf16.mxu1 %v5610_v2 }
 0xa16   : > { %5300 = vmatpush3.bf16.msra.mxu1 %v5418_v41  ;;  %v2113_v41 = vld [vmem:[%s5714_s10 + $0x100] sm:$0xff] }
 0xa17   : > { %5317 = vmatprep.subr.bf16.mxu1 %v5610_v2 }
 0xa19   : > { %5302 = vmatmul.mubr.msk.bf16.vlgmr.msra.gmra.mrb[44].mxu1 %vm501_vm2, %v5757_v11 }
 0xa1a   : > { %5319 = vmatprep.mubr.msk.bf16.mxu1 %vm5611_vm1, %v5610_v2  ;;  %5318 = vmatpush3.bf16.msra.mxu1 %v5419_v58  ;;  %v2092_v58 = vld [vmem:[%s5714_s10 + $0x58] sm:$0xff] }
 0xacc   : > { %v1595_v5 = vpop.f32.mrb[36].mxu1 }
 0xacd   : > { %v1604_v7 = vpack.c.bf16 %v1595_v5, %v1595_v5  ;;  %v5261_v8 = vpop.f32.mrb[37].mxu1  ;;  %v5982_v5 = vsub.s32 0, %v5788_v33 }
 0xace   : > { %v1598_v9 = vpop.f32.mrb[38].mxu1 }
 0xacf   : > { %v5262_v10 = vpop.f32.mrb[39].mxu1  ;;  %5266 = vmatmul.mubr.msk.bf16.vlgmr.msra.gmra.mrb[28].mxu0 %vm705_vm3, %v1604_v7 }
 0xad0   : > { %5282 = vmatpush3.bf16.msra.mxu0 %v5407_v6  ;;  %5289 = vmatprep.mubr.msk.bf16.mxu0 %vm5611_vm1, %v5610_v2  ;;  %v5985_v6 = vld [vmem:[%s5729_s26] sm:$0xff] }
 0xad1   : > { %5283 = vmatprep.subr.bf16.mxu0 %v5610_v2  ;;  %v2054_v7 = vrot.slane %v5985_v6, %v5982_v5 }
 0xad4   : > { %5284 = vmatpush3.bf16.msra.mxu0 %v5409_v12 }
 0xad5   : > { %5285 = vmatprep.subr.bf16.mxu0 %v5610_v2 }
 0xad8   : > { %5286 = vmatpush3.bf16.msra.mxu0 %v5411_v13 }
 0xad9   : > { %5287 = vmatprep.subr.bf16.mxu0 %v5610_v2 }
 0xadc   : > { %5288 = vmatpush3.bf16.msra.mxu0 %v5413_v14  ;;  %v1727_v15 = vpop.f32.mrb[40].mxu1 }
 0xadd   : > { %5305 = vmatprep.subr.bf16.mxu0 %v5610_v2  ;;  %v5279_v16 = vpop.f32.mrb[41].mxu1  ;;  %v1728_v30 = vadd.f32 %v4600_v26, %v1727_v15  ;;  %v5568_v15 = vld [vmem:[#allocation2] sm:$0xff]  ;;  %v2082_v26 = vld [vmem:[%s5714_s10 + $0x8] sm:$0xff] }
 0xade   : > { %v1730_v17 = vpop.f32.mrb[42].mxu1 }
 0xadf   : > { %5290 = vmatmul.mubr.msk.bf16.vlgmr.msra.gmra.mrb[32].mxu0 %vm501_vm2, %v5757_v11  ;;  %v5280_v18 = vpop.f32.mrb[43].mxu1 }
 0xae0   : > { %5307 = vmatprep.mubr.msk.bf16.mxu0 %vm5611_vm1, %v5610_v2 }
 0xaec   : > { %v1886_v49 = vpop.f32.mrb[44].mxu1 }
 0xaed   : > { %v1887_v50 = vadd.f32 %v4628_v48, %v1886_v49  ;;  %v5303_v51 = vpop.f32.mrb[45].mxu1  ;;  %v2129_v49 = vld [vmem:[%s5714_s10 + $0x180] sm:$0xff] }
 0xaee   : > { %v1889_v52 = vpop.f32.mrb[46].mxu1  ;;  %v2130_v51 = vld [vmem:[%s5714_s10 + $0x188] sm:$0xff] }
 0xaef   : > { %v1892_v53 = vpack.c.bf16 %v1887_v50, %v1887_v50  ;;  %v5304_v11 = vpop.f32.mrb[47].mxu1  ;;  %v2137_v50 = vld [vmem:[%s5714_s10 + $0x1c0] sm:$0xff] }
 0xaf0   : > { %v4689_v52 = vcombine.high %v2129_v49, %v2137_v50  ;;  %v4688_v11 = vcombine.low %v2129_v49, %v2137_v50  ;;  %v2110_v49 = vld [vmem:[%s5714_s10 + $0xe8] sm:$0xff] }
 0xaf1   : > { %v1955_v54 = vsel %vm768_vm6, %v1892_v53, 0  ;;  %v2138_v53 = vld [vmem:[%s5714_s10 + $0x1c8] sm:$0xff] }
 0xba2   : > { %v1648_v19 = vpop.f32.mrb[28].mxu0 }
 0xba3   : > { %v5952_v20 = vadd.f32 %v1648_v19, %v5895_v22  ;;  %v5267_v21 = vpop.f32.mrb[29].mxu0  ;;  %v1733_v22 = vmul.f32 0.25, %v1728_v30 }
 0xba4   : > { %v1651_v23 = vpop.f32.mrb[30].mxu0 }
 0xba5   : > { %v5268_v24 = vpop.f32.mrb[31].mxu0  ;;  %v1734_v37 = vpack.c.bf16 %v1733_v22, %v1733_v22 }
 0xba6   : > { %v2081_v24 = vld [vmem:[%s5714_s10] sm:$0xff] }
 0xbb2   : > { %v1807_v27 = vpop.f32.mrb[32].mxu0 }
 0xbb3   : > { %v1808_v28 = vadd.f32 %v4614_v25, %v1807_v27  ;;  %v5291_v29 = vpop.f32.mrb[33].mxu0  ;;  %v2089_v25 = vld [vmem:[%s5714_s10 + $0x40] sm:$0xff] }
 0xbb4   : > { %v1810_v31 = vpop.f32.mrb[34].mxu0  ;;  %v4641_v27 = vcombine.high %v2081_v24, %v2089_v25  ;;  %v4640_v29 = vcombine.low %v2081_v24, %v2089_v25  ;;  %v2124_v24 = vld [vmem:[%s5714_s10 + $0x158] sm:$0xff] }
 0xbb5   : > { %v1813_v32 = vpack.c.bf16 %v1808_v28, %v1808_v28  ;;  %v5292_v34 = vpop.f32.mrb[35].mxu0  ;;  %v2090_v28 = vld [vmem:[%s5714_s10 + $0x48] sm:$0xff] }
 0xbb6   : > { %v4642_v30 = vcombine.low %v2082_v26, %v2090_v28  ;;  %v4643_v31 = vcombine.high %v2082_v26, %v2090_v28  ;;  %v2105_v34 = vld [vmem:[%s5714_s10 + $0xc0] sm:$0xff] }
 0xbb7   : > { %v1897_v35 = vsel %vm705_vm3, %v1813_v32, 0  ;;  %v2097_v32 = vld [vmem:[%s5714_s10 + $0x80] sm:$0xff] }
 0xbb8   : > { %5306 = vmatpush3.bf16.xpose.msra.mxu0 %v1897_v35  ;;  %2594 = vmatprep.subr.bf16.mxu1 %v4643_v31  ;;  %v2098_v35 = vld [vmem:[%s5714_s10 + $0x88] sm:$0xff]  ;;  %v4657_v22 = vcombine.high %v2097_v32, %v2105_v34  ;;  %v4656_v38 = vcombine.low %v2097_v32, %v2105_v34  ;;  %v2132_v31 = vld [vmem:[%s5714_s10 + $0x198] sm:$0xff] }
 0xbb9   : > { %5311 = vmatprep.subr.bf16.mxu0 %v5610_v2  ;;  %v2140_v32 = vld [vmem:[%s5714_s10 + $0x1d8] sm:$0xff] }
 0xbbf   : > { %5308 = vmatmul.mubr.msk.bf16.vlgmr.msra.gmra.mrb[36].mxu0 %vm705_vm3, %v1734_v37  ;;  %v2106_v37 = vld [vmem:[%s5714_s10 + $0xc8] sm:$0xff] }
 0xbc0   : > { %5313 = vmatprep.mubr.msk.bf16.mxu0 %vm5611_vm1, %v5610_v2  ;;  %5312 = vmatpush3.bf16.msra.mxu0 %v1955_v54  ;;  %v4658_v39 = vcombine.low %v2098_v35, %v2106_v37  ;;  %v4659_v40 = vcombine.high %v2098_v35, %v2106_v37  ;;  %v4690_v54 = vcombine.low %v2130_v51, %v2138_v53 }
 0xbc1   : > { %2553 = vmatprep.subr.bf16.mxu0 %v4641_v27  ;;  %v4695_v37 = vcombine.high %v2132_v31, %v2140_v32 }
 0xc92   : > { %v1933_v42 = vpop.f32.mrb[36].mxu0 }
 0xc93   : > { %v1934_v43 = vadd.f32 %v1933_v42, %v5791_v36  ;;  %v5309_v44 = vpop.f32.mrb[37].mxu0  ;;  %v2121_v42 = vld [vmem:[%s5714_s10 + $0x140] sm:$0xff] }
 0xc94   : > { %v1936_v45 = vpop.f32.mrb[38].mxu0  ;;  %v4673_v44 = vcombine.high %v2113_v41, %v2121_v42 }
 0xc95   : > { %v5310_v46 = vpop.f32.mrb[39].mxu0  ;;  %v1939_v47 = vsel %vm752_vm5, %v1934_v43, -inf  ;;  %v2122_v45 = vld [vmem:[%s5714_s10 + $0x148] sm:$0xff] }
 0xc96   : > { %1940 = vmax.xlane.f32.xlu0 %v1939_v47  ;;  %v4672_v46 = vcombine.low %v2113_v41, %v2121_v42  ;;  %v2094_v41 = vld [vmem:[%s5714_s10 + $0x68] sm:$0xff] }
 0xd23   : > { %v1941_v2 = vpop.xlane.xlu0 %1940 }
 0xd24   : > { %v1942_v55 = vsub.f32 %v1934_v43, %v1941_v2  ;;  %v2114_v43 = vld [vmem:[%s5714_s10 + $0x108] sm:$0xff]  ;;  %v4691_v2 = vcombine.high %v2130_v51, %v2138_v53 }
 0xd25   : > { %v4674_v47 = vcombine.low %v2114_v43, %v2122_v45  ;;  %v4675_v48 = vcombine.high %v2114_v43, %v2122_v45  ;;  %v4694_v43 = vcombine.low %v2132_v31, %v2140_v32  ;;  %v2128_v31 = vld [vmem:[%s5714_s10 + $0x178] sm:$0xff] }
 0xd26   : > { %v1943_v36 = vmul.f32 1.442695, %v1942_v55  ;;  %v2083_v55 = vld [vmem:[%s5714_s10 + $0x10] sm:$0xff] }
 0xd28   : > { %5560 = vpow2.f32 %v1943_v36  ;;  %v2091_v36 = vld [vmem:[%s5714_s10 + $0x50] sm:$0xff] }
 0xd32   : > { %v5561_v56 = vpop.eup %5560 }
 0xd33   : > { %v1945_v57 = vsel %vm752_vm5, %v5561_v56, 0.0 }
 0xd34   : > { %1946 = vadd.xlane.f32.xlu1 %v1945_v57  ;;  %v4645_v57 = vcombine.high %v2083_v55, %v2091_v36 }
 0xdc1   : > { %v1947_v59 = vpop.xlane.xlu1 %1946 }
 0xdc2   : > { %5562 = vrcp.f32 %v1947_v59  ;;  %v4644_v59 = vcombine.low %v2083_v55, %v2091_v36  ;;  %v2126_v55 = vld [vmem:[%s5714_s10 + $0x168] sm:$0xff] }
 0xdcc   : > { %v5563_v60 = vpop.eup %5562 }
 0xdcd   : > { %v1949_v61 = vmul.f32 %v5563_v60, %v5561_v56  ;;  %v2084_v56 = vld [vmem:[%s5714_s10 + $0x18] sm:$0xff] }
 0xdce   : > { %v4646_v60 = vcombine.low %v2084_v56, %v2092_v58 }
 0xdcf   : > { %v1950_v62 = vpack.c.bf16 %v1949_v61, %v1949_v61  ;;  %v4647_v61 = vcombine.high %v2084_v56, %v2092_v58 }
 0xdd1   : > { %5314 = vmatmul.mubr.msk.bf16.vlgmr.msra.gmra.mrb[40].mxu0 %vm752_vm5, %v1950_v62  ;;  %v5613_v62 = vmov 0  }
 0xdd2   : > { %2554 = vmatpush1.bf16.msra.mxu0 %v4640_v29  ;;  %2585 = vmatprep.mubr.bf16.mxu0 %v5613_v62  ;;  %v2131_v29 = vld [vmem:[%s5714_s10 + $0x190] sm:$0xff] }
 0xdd3   : > { %2555 = vmatprep.subr.bf16.mxu0 %v4657_v22 }
 0xdd6   : > { %2556 = vmatpush1.bf16.msra.mxu0 %v4656_v38  ;;  %v2085_v38 = vld [vmem:[%s5714_s10 + $0x20] sm:$0xff] }
 0xdd7   : > { %2557 = vmatprep.subr.bf16.mxu0 %v4673_v44 }
 0xdda   : > { %2558 = vmatpush1.bf16.msra.mxu0 %v4672_v46  ;;  %v2101_v46 = vld [vmem:[%s5714_s10 + $0xa0] sm:$0xff] }
 0xddb   : > { %2559 = vmatprep.subr.bf16.mxu0 %v4689_v52 }
 0xdde   : > { %2560 = vmatpush1.bf16.msra.mxu0 %v4688_v11  ;;  %v2117_v11 = vld [vmem:[%s5714_s10 + $0x120] sm:$0xff] }
 0xddf   : > { %2635 = vmatprep.subr.bf16.mxu0 %v4645_v57 }
 0xea4   : > { %v1991_v63 = vpop.f32.mrb[40].mxu0 }
 0xea5   : > { %v2000_v0 = vpack.c.bf16 %v1991_v63, %v1991_v63  ;;  %v5315_v1 = vpop.f32.mrb[41].mxu0 }
 0xea6   : > { %v1994_v3 = vpop.f32.mrb[42].mxu0 }
 0xea7   : > { %v5316_v4 = vpop.f32.mrb[43].mxu0  ;;  %5320 = vmatmul.mubr.msk.bf16.vlgmr.msra.gmra.mrb[48].mxu1 %vm705_vm3, %v2000_v0  ;;  %v6019_v3 = vsub.s32 1, %v5788_v33 }
 0xea8   : > { %2595 = vmatpush1.bf16.msra.mxu1 %v4642_v30  ;;  %2626 = vmatprep.mubr.bf16.mxu1 %v5613_v62  ;;  %v6022_v4 = vsub.s32 2, %v5788_v33  ;;  %v2139_v30 = vld [vmem:[%s5714_s10 + $0x1d0] sm:$0xff] }
 0xea9   : > { %2596 = vmatprep.subr.bf16.mxu1 %v4659_v40  ;;  %v4693_v22 = vcombine.high %v2131_v29, %v2139_v30  ;;  %v2086_v40 = vld [vmem:[%s5714_s10 + $0x28] sm:$0xff]  ;;  %v4692_v42 = vcombine.low %v2131_v29, %v2139_v30  ;;  %v2127_v29 = vld [vmem:[%s5714_s10 + $0x170] sm:$0xff]  ;;  %v2120_v30 = vld [vmem:[%s5714_s10 + $0x138] sm:$0xff] }
 0xeaa   : > { %v4651_v45 = vcombine.high %v2086_v40, %v2094_v41  ;;  %v4650_v51 = vcombine.low %v2086_v40, %v2094_v41  ;;  %v2144_v40 = vld [vmem:[%s5714_s10 + $0x1f8] sm:$0xff] }
 0xeac   : > { %2597 = vmatpush1.bf16.msra.mxu1 %v4658_v39  ;;  %v2093_v39 = vld [vmem:[%s5714_s10 + $0x60] sm:$0xff] }
 0xead   : > { %2598 = vmatprep.subr.bf16.mxu1 %v4675_v48  ;;  %v4649_v44 = vcombine.high %v2085_v38, %v2093_v39  ;;  %v2102_v48 = vld [vmem:[%s5714_s10 + $0xa8] sm:$0xff]  ;;  %v4648_v50 = vcombine.low %v2085_v38, %v2093_v39  ;;  %v2143_v38 = vld [vmem:[%s5714_s10 + $0x1f0] sm:$0xff]  ;;  %v2136_v39 = vld [vmem:[%s5714_s10 + $0x1b8] sm:$0xff] }
 0xeae   : > { %v4667_v53 = vcombine.high %v2102_v48, %v2110_v49  ;;  %v4666_v56 = vcombine.low %v2102_v48, %v2110_v49  ;;  %v5422_v48 = vld [vmem:[%s5724_s2] sm:$0xff]  }
 0xeaf   : > { %v5423_v49 = vld [vmem:[%s5724_s2 + $0x80] sm:$0xff]  }
 0xeb0   : > { %2599 = vmatpush1.bf16.msra.mxu1 %v4674_v47  ;;  %v2109_v47 = vld [vmem:[%s5714_s10 + $0xe0] sm:$0xff] }
 0xeb1   : > { %2600 = vmatprep.subr.bf16.mxu1 %v4691_v2  ;;  %v4665_v52 = vcombine.high %v2101_v46, %v2109_v47  ;;  %v2118_v2 = vld [vmem:[%s5714_s10 + $0x128] sm:$0xff]  ;;  %v4664_v36 = vcombine.low %v2101_v46, %v2109_v47  ;;  %v4702_v46 = vcombine.low %v2136_v39, %v2144_v40  ;;  %v5421_v47 = vld [vmem:[%s5724_s2 + $0xc0] sm:$0xff]  }
 0xeb2   : > { %v4683_v58 = vcombine.high %v2118_v2, %v2126_v55 }
 0xeb4   : > { %2601 = vmatpush1.bf16.msra.mxu1 %v4690_v54  ;;  %v2125_v54 = vld [vmem:[%s5714_s10 + $0x160] sm:$0xff] }
 0xeb5   : > { %2676 = vmatprep.subr.bf16.mxu1 %v4647_v61  ;;  %v4681_v57 = vcombine.high %v2117_v11, %v2125_v54  ;;  %v2134_v61 = vld [vmem:[%s5714_s10 + $0x1a8] sm:$0xff] }
 0xf7a   : > { %v2044_v8 = vpop.f32.mrb[48].mxu1 }
 0xf7b   : > { %v2050_v9 = vadd.f32 %v2044_v8, %v5952_v20  ;;  %v5321_v10 = vpop.f32.mrb[49].mxu1 }
 0xf7c   : > { %v2047_v12 = vpop.f32.mrb[50].mxu1 }
 0xf7d   : > { %v2055_v13 = vadd.f32 %v2054_v7, %v2050_v9  ;;  %v5322_v14 = vpop.f32.mrb[51].mxu1  ;;  %v2074_v7 = vrot.slane %v5985_v6, %v6019_v3  ;;  %v2079_v9 = vrot.slane %v5985_v6, %v6022_v4  ;;  %v2123_v6 = vld [vmem:[%s5714_s10 + $0x150] sm:$0xff] }
 0xf7e   : > { %v2107_v14 = vld [vmem:[%s5714_s10 + $0xd0] sm:$0xff] }
 0xf7f   : > { %v2056_v16 = vadd.f32 %v5568_v15, %v2055_v13  ;;  %v2099_v13 = vld [vmem:[%s5714_s10 + $0x90] sm:$0xff]  ;;  %v2100_v15 = vld [vmem:[%s5714_s10 + $0x98] sm:$0xff] }
 0xf80   : > { %v4660_v25 = vcombine.low %v2099_v13, %v2107_v14 }
 0xf81   : > { %v2057_v17 = vsel %vm501_vm2, %v2056_v16, 0.0 }
 0xf82   : > { %2058 = vadd.xlane.f32.xlu0 %v2057_v17 }
0x100f   : > { %v2059_v18 = vpop.xlane.xlu0 %2058 }
0x1010   : > { %v2061_v19 = vmul.f32 0.015625, %v2059_v18 }
0x1012   : > { %v5991_v21 = vsub.f32 %v2056_v16, %v2061_v19  ;;  %v2108_v16 = vld [vmem:[%s5714_s10 + $0xd8] sm:$0xff]  ;;  %v4661_v19 = vcombine.high %v2099_v13, %v2107_v14 }
0x1013   : > { %v4662_v26 = vcombine.low %v2100_v15, %v2108_v16  ;;  %v2096_v13 = vld [vmem:[%s5714_s10 + $0x78] sm:$0xff] }
0x1014   : > { %v2063_v20 = vmul.f32 %v5991_v21, %v5991_v21 }
0x1016   : > { %v2064_v23 = vsel %vm501_vm2, %v2063_v20, 0.0  ;;  %v4663_v20 = vcombine.high %v2100_v15, %v2108_v16 }
0x1017   : > { %2065 = vadd.xlane.f32.xlu1 %v2064_v23  ;;  %v2115_v23 = vld [vmem:[%s5714_s10 + $0x110] sm:$0xff] }
0x1018   : > { %v4677_v27 = vcombine.high %v2115_v23, %v2123_v6  ;;  %v4676_v34 = vcombine.low %v2115_v23, %v2123_v6  ;;  %v2111_v23 = vld [vmem:[%s5714_s10 + $0xf0] sm:$0xff]  ;;  %v2104_v6 = vld [vmem:[%s5714_s10 + $0xb8] sm:$0xff] }
0x10a4   : > { %v2066_v63 = vpop.xlane.xlu1 %2065 }
0x10a5   : > { %v2067_v0 = vmul.f32 0.015625, %v2066_v63  ;;  %v2142_v63 = vld [vmem:[%s5714_s10 + $0x1e8] sm:$0xff] }
0x10a6   : > { %v4698_v15 = vcombine.low %v2134_v61, %v2142_v63 }
0x10a7   : > { %v2068_v1 = vadd.f32 1e-05, %v2067_v0  ;;  %v4680_v0 = vcombine.low %v2117_v11, %v2125_v54  ;;  %v5428_v11 = vld [vmem:[%s5724_s2 + $0x50] sm:$0xff]  }
0x10a8   : > { %v5429_v54 = vld [vmem:[%s5724_s2 + $0xd0] sm:$0xff]  }
0x10a9   : > { %5564 = vrsqrt.f32 %v2068_v1  ;;  %v4682_v1 = vcombine.low %v2118_v2, %v2126_v55  ;;  %v5430_v2 = vld [vmem:[%s5724_s2 + $0x10] sm:$0xff]  }
0x10aa   : > { %v5431_v55 = vld [vmem:[%s5724_s2 + $0x90] sm:$0xff]  }
0x10b3   : > { %v5565_v8 = vpop.eup %5564 }
0x10b4   : > { %v2070_v10 = vmul.f32 %v5565_v8, %v5991_v21  ;;  %v2116_v21 = vld [vmem:[%s5714_s10 + $0x118] sm:$0xff]  ;;  %v4699_v8 = vcombine.high %v2134_v61, %v2142_v63  ;;  %v5439_v61 = vld [vmem:[%s5724_s2 + $0xa0] sm:$0xff]   ;;  %v5440_v63 = vld [vmem:[%s5724_s2 + $0x68] sm:$0xff]  }
0x10b5   : > { %v4679_v28 = vcombine.high %v2116_v21, %v2124_v24  ;;  %v4678_v35 = vcombine.low %v2116_v21, %v2124_v24  ;;  %v2112_v21 = vld [vmem:[%s5714_s10 + $0xf8] sm:$0xff] }
0x10b6   : > { %v2075_v12 = vmul.f32 %v2074_v7, %v2070_v10  ;;  %v2095_v10 = vld [vmem:[%s5714_s10 + $0x70] sm:$0xff] }
0x10b8   : > { %v6033_v17 = vadd.f32 %v2079_v9, %v2075_v12  ;;  %v2087_v9 = vld [vmem:[%s5714_s10 + $0x30] sm:$0xff]  ;;  %v2088_v12 = vld [vmem:[%s5714_s10 + $0x38] sm:$0xff] }
0x10b9   : > { %v4653_v16 = vcombine.high %v2087_v9, %v2095_v10  ;;  %v4652_v24 = vcombine.low %v2087_v9, %v2095_v10  ;;  %v5445_v9 = vld [vmem:[%s5724_s2 + $0xf0] sm:$0xff]  }
0x10ba   : > { %v6037_v18 = vpack.c.bf16 %v6033_v17, %v6033_v17  ;;  %v5446_v10 = vld [vmem:[%s5724_s2 + $0x30] sm:$0xff]  }
0x10bc   : > { %4704 = vmatmul.mubr.msk.bf16.vlgmr.msra.gmra.mrb[44].mxu0 %vm501_vm2, %v6037_v18  ;;  %4705 = vmatmul.mubr.msk.bf16.vlgmr.msra.gmra.mrb[52].mxu1 %vm501_vm2, %v6037_v18 }
0x10bd   : > { %2636 = vmatpush1.bf16.msra.mxu0 %v4644_v59  ;;  %2677 = vmatpush1.bf16.msra.mxu1 %v4646_v60  ;;  %v2133_v59 = vld [vmem:[%s5714_s10 + $0x1a0] sm:$0xff] }
0x10be   : > { %2637 = vmatprep.subr.bf16.mxu0 %v4661_v19  ;;  %2678 = vmatprep.subr.bf16.mxu1 %v4663_v20  ;;  %v2141_v60 = vld [vmem:[%s5714_s10 + $0x1e0] sm:$0xff]  ;;  %v4655_v19 = vcombine.high %v2088_v12, %v2096_v13  ;;  %v2103_v20 = vld [vmem:[%s5714_s10 + $0xb0] sm:$0xff] }
0x10bf   : > { %2667 = vmatprep.mubr.bf16.mxu0 %v5613_v62  ;;  %2708 = vmatprep.mubr.bf16.mxu1 %v5613_v62  ;;  %v4697_v7 = vcombine.high %v2133_v59, %v2141_v60  ;;  %v4696_v14 = vcombine.low %v2133_v59, %v2141_v60  ;;  %v4668_v32 = vcombine.low %v2103_v20, %v2111_v23  ;;  %v5437_v59 = vld [vmem:[%s5724_s2 + $0xe0] sm:$0xff]  }
0x10c0   : > { %v5438_v60 = vld [vmem:[%s5724_s2 + $0x20] sm:$0xff]  }
0x10c1   : > { %2638 = vmatpush1.bf16.msra.mxu0 %v4660_v25  ;;  %2679 = vmatpush1.bf16.msra.mxu1 %v4662_v26  ;;  %v4654_v25 = vcombine.low %v2088_v12, %v2096_v13  ;;  %v4669_v26 = vcombine.high %v2103_v20, %v2111_v23  ;;  %v5447_v12 = vld [vmem:[%s5724_s2 + $0xb0] sm:$0xff]   ;;  %v5448_v13 = vld [vmem:[%s5724_s2 + $0x78] sm:$0xff]   ;;  %v5453_v20 = vld [vmem:[%s5724_s2 + $0x1c0] sm:$0xff]   ;;  %v2176_v23 = vsub.s32 6, %v5788_v33 }
0x10c2   : > { %2639 = vmatprep.subr.bf16.mxu0 %v4677_v27  ;;  %2680 = vmatprep.subr.bf16.mxu1 %v4679_v28  ;;  %v4671_v27 = vcombine.high %v2104_v6, %v2112_v21  ;;  %v2119_v28 = vld [vmem:[%s5714_s10 + $0x130] sm:$0xff] }
0x10c3   : > { %v4684_v41 = vcombine.low %v2119_v28, %v2127_v29 }
0x10c5   : > { %2640 = vmatpush1.bf16.msra.mxu0 %v4676_v34  ;;  %2681 = vmatpush1.bf16.msra.mxu1 %v4678_v35  ;;  %v4670_v34 = vcombine.low %v2104_v6, %v2112_v21  ;;  %v4685_v35 = vcombine.high %v2119_v28, %v2127_v29  ;;  %v6137_v6 = vld [vmem:[%s5719_s17 + $0x8] sm:$0xff] }
0x10c6   : > { %2641 = vmatprep.subr.bf16.mxu0 %v4693_v22  ;;  %2682 = vmatprep.subr.bf16.mxu1 %v4695_v37  ;;  %v4687_v22 = vcombine.high %v2120_v30, %v2128_v31  ;;  %v2135_v37 = vld [vmem:[%s5714_s10 + $0x1b0] sm:$0xff]  ;;  %v6142_v21 = vrot.slane %v6137_v6, %v2176_v23 }
0x10c9   : > { %2642 = vmatpush1.bf16.msra.mxu0 %v4692_v42  ;;  %2683 = vmatpush1.bf16.msra.mxu1 %v4694_v43  ;;  %v4686_v42 = vcombine.low %v2120_v30, %v2128_v31  ;;  %v4701_v43 = vcombine.high %v2135_v37, %v2143_v38 }
0x10ca   : > { %2717 = vmatprep.subr.bf16.mxu0 %v4649_v44  ;;  %2758 = vmatprep.subr.bf16.mxu1 %v4651_v45  ;;  %v4703_v44 = vcombine.high %v2136_v39, %v2144_v40  ;;  %v4700_v45 = vcombine.low %v2135_v37, %v2143_v38 }
0x10cc   : > { %4706 = vmatmul.mubr.msk.bf16.vlgmr.msra.gmra.mrb[48].mxu0 %vm501_vm2, %v6037_v18  ;;  %4707 = vmatmul.mubr.msk.bf16.vlgmr.msra.gmra.mrb[56].mxu1 %vm501_vm2, %v6037_v18 }
0x10cd   : > { %2718 = vmatpush1.bf16.msra.mxu0 %v4648_v50  ;;  %2759 = vmatpush1.bf16.msra.mxu1 %v4650_v51  ;;  %v5424_v50 = vld [vmem:[%s5724_s2 + $0x48] sm:$0xff]  }
0x10ce   : > { %2719 = vmatprep.subr.bf16.mxu0 %v4665_v52  ;;  %2760 = vmatprep.subr.bf16.mxu1 %v4667_v53  ;;  %v5425_v51 = vld [vmem:[%s5724_s2 + $0xc8] sm:$0xff]  }
0x10cf   : > { %2749 = vmatprep.mubr.bf16.mxu0 %v5613_v62  ;;  %2790 = vmatprep.mubr.bf16.mxu1 %v5613_v62  ;;  %v5426_v52 = vld [vmem:[%s5724_s2 + $0x8] sm:$0xff]  }
0x10d0   : > { %v5427_v53 = vld [vmem:[%s5724_s2 + $0x88] sm:$0xff]  }
0x10d1   : > { %2720 = vmatpush1.bf16.msra.mxu0 %v4664_v36  ;;  %2761 = vmatpush1.bf16.msra.mxu1 %v4666_v56  ;;  %v5433_v36 = vld [vmem:[%s5724_s2 + $0xd8] sm:$0xff]  }
0x10d2   : > { %2721 = vmatprep.subr.bf16.mxu0 %v4681_v57  ;;  %2762 = vmatprep.subr.bf16.mxu1 %v4683_v58  ;;  %v5434_v56 = vld [vmem:[%s5724_s2 + $0x18] sm:$0xff]   ;;  %v5436_v58 = vld [vmem:[%s5724_s2 + $0x60] sm:$0xff]  }
0x10d3   : > { %v5435_v57 = vld [vmem:[%s5724_s2 + $0x98] sm:$0xff]  }
0x10d5   : > { %2722 = vmatpush1.bf16.msra.mxu0 %v4680_v0  ;;  %2763 = vmatpush1.bf16.msra.mxu1 %v4682_v1  ;;  %v5441_v0 = vld [vmem:[%s5724_s2 + $0xe8] sm:$0xff]  }
0x10d6   : > { %2723 = vmatprep.subr.bf16.mxu0 %v4697_v7  ;;  %2764 = vmatprep.subr.bf16.mxu1 %v4699_v8  ;;  %v5442_v1 = vld [vmem:[%s5724_s2 + $0x28] sm:$0xff]   ;;  %v5444_v8 = vld [vmem:[%s5724_s2 + $0x70] sm:$0xff]  }
0x10d7   : > { %v5443_v7 = vld [vmem:[%s5724_s2 + $0xa8] sm:$0xff]  }
0x10d9   : > { %2724 = vmatpush1.bf16.msra.mxu0 %v4696_v14  ;;  %2765 = vmatpush1.bf16.msra.mxu1 %v4698_v15  ;;  %v5449_v14 = vld [vmem:[%s5724_s2 + $0xf8] sm:$0xff]  }
0x10da   : > { %2799 = vmatprep.subr.bf16.mxu0 %v4653_v16  ;;  %2840 = vmatprep.subr.bf16.mxu1 %v4655_v19  ;;  %v5450_v15 = vld [vmem:[%s5724_s2 + $0x38] sm:$0xff]   ;;  %v5452_v19 = vld [vmem:[%s5724_s2 + $0x140] sm:$0xff]  }
0x10db   : > { %v5451_v16 = vld [vmem:[%s5724_s2 + $0xb8] sm:$0xff]  }
0x10dc   : > { %4708 = vmatmul.mubr.msk.bf16.vlgmr.msra.gmra.mrb[52].mxu0 %vm501_vm2, %v6037_v18  ;;  %4709 = vmatmul.mubr.msk.bf16.vlgmr.msra.gmra.mrb[60].mxu1 %vm501_vm2, %v6037_v18 }
0x10dd   : > { %2800 = vmatpush1.bf16.msra.mxu0 %v4652_v24  ;;  %2841 = vmatpush1.bf16.msra.mxu1 %v4654_v25  ;;  %v6145_v24 = vld [vmem:[%s5719_s17] sm:$0xff]  ;;  %v6148_v25 = vsub.s32 3, %v5788_v33 }
0x10de   : > { %2801 = vmatprep.subr.bf16.mxu0 %v4669_v26  ;;  %2842 = vmatprep.subr.bf16.mxu1 %v4671_v27  ;;  %v2153_v26 = vrot.slane %v6145_v24, %v5982_v5  ;;  %v2161_v27 = vrot.slane %v6145_v24, %v6022_v4  ;;  %v2157_v28 = vrot.slane %v6145_v24, %v6019_v3 }
0x10df   : > { %2831 = vmatprep.mubr.bf16.mxu0 %v5613_v62  ;;  %2872 = vmatprep.mubr.bf16.mxu1 %v5613_v62  ;;  %v5420_v62 = vld [vmem:[%s5724_s2 + $0x40] sm:$0xff]   ;;  %v2165_v29 = vrot.slane %v6145_v24, %v6148_v25 }
0x10e1   : > { %2802 = vmatpush1.bf16.msra.mxu0 %v4668_v32  ;;  %2843 = vmatpush1.bf16.msra.mxu1 %v4670_v34 }
0x10e2   : > { %2803 = vmatprep.subr.bf16.mxu0 %v4685_v35  ;;  %2844 = vmatprep.subr.bf16.mxu1 %v4687_v22 }
0x10e5   : > { %2804 = vmatpush1.bf16.msra.mxu0 %v4684_v41  ;;  %2845 = vmatpush1.bf16.msra.mxu1 %v4686_v42 }
0x10e6   : > { %2805 = vmatprep.subr.bf16.mxu0 %v4701_v43  ;;  %2846 = vmatprep.subr.bf16.mxu1 %v4703_v44 }
0x10e9   : > { %2806 = vmatpush1.bf16.msra.mxu0 %v4700_v45  ;;  %2847 = vmatpush1.bf16.msra.mxu1 %v4702_v46 }
0x10ea   : > { %4931 = vmatprep.subr.bf16.mxu0 %v5420_v62  ;;  %4953 = vmatprep.subr.bf16.mxu1 %v5421_v47 }
0x10ec   : > { %4710 = vmatmul.mubr.msk.bf16.vlgmr.msra.gmra.mrb[56].mxu0 %vm501_vm2, %v6037_v18  ;;  %4711 = vmatmul.mubr.msk.bf16.vlgmr.msra.gmra.mrb[64].mxu1 %vm501_vm2, %v6037_v18  ;;  %v5432_v18 = vld [vmem:[%s5724_s2 + $0x58] sm:$0xff]  }
0x10ed   : > { %4932 = vmatpush3.bf16.msra.mxu0 %v5422_v48  ;;  %4954 = vmatpush3.bf16.msra.mxu1 %v5423_v49  ;;  %v5454_v48 = vld [vmem:[%s5724_s2 + $0x100] sm:$0xff]  }
0x10ee   : > { %4933 = vmatprep.subr.bf16.mxu0 %v5424_v50  ;;  %4955 = vmatprep.subr.bf16.mxu1 %v5425_v51  ;;  %v5455_v49 = vld [vmem:[%s5724_s2 + $0x180] sm:$0xff]  }
0x10f1   : > { %4934 = vmatpush3.bf16.msra.mxu0 %v5426_v52  ;;  %4956 = vmatpush3.bf16.msra.mxu1 %v5427_v53  ;;  %v5456_v52 = vld [vmem:[%s5724_s2 + $0x148] sm:$0xff]  }
0x10f2   : > { %4935 = vmatprep.subr.bf16.mxu0 %v5428_v11  ;;  %4957 = vmatprep.subr.bf16.mxu1 %v5429_v54  ;;  %v5457_v53 = vld [vmem:[%s5724_s2 + $0x1c8] sm:$0xff]  }
0x10f3   : > { %v5458_v11 = vld [vmem:[%s5724_s2 + $0x108] sm:$0xff]  }
0x10f4   : > { %v5459_v54 = vld [vmem:[%s5724_s2 + $0x188] sm:$0xff]  }
0x10f5   : > { %4936 = vmatpush3.bf16.msra.mxu0 %v5430_v2  ;;  %4958 = vmatpush3.bf16.msra.mxu1 %v5431_v55  ;;  %v6165_v2 = vsub.s32 5, %v5788_v33  ;;  %v2180_v55 = vsub.s32 7, %v5788_v33 }
0x10f6   : > { %4937 = vmatprep.subr.bf16.mxu0 %v5432_v18  ;;  %4959 = vmatprep.subr.bf16.mxu1 %v5433_v36  ;;  %v5460_v18 = vld [vmem:[%s5724_s2 + $0x150] sm:$0xff]  }
0x10f7   : > { %v5461_v36 = vld [vmem:[%s5724_s2 + $0x1d0] sm:$0xff]  }
0x10f9   : > { %4938 = vmatpush3.bf16.msra.mxu0 %v5434_v56  ;;  %4960 = vmatpush3.bf16.msra.mxu1 %v5435_v57  ;;  %v2173_v56 = vrot.slane %v6145_v24, %v6165_v2  ;;  %v2181_v57 = vrot.slane %v6145_v24, %v2180_v55 }
0x10fa   : > { %4939 = vmatprep.subr.bf16.mxu0 %v5436_v58  ;;  %4961 = vmatprep.subr.bf16.mxu1 %v5437_v59  ;;  %v5462_v58 = vld [vmem:[%s5724_s2 + $0x110] sm:$0xff]  }
0x10fb   : > { %v5463_v59 = vld [vmem:[%s5724_s2 + $0x190] sm:$0xff]  }
0x10fd   : > { %4940 = vmatpush3.bf16.msra.mxu0 %v5438_v60  ;;  %4962 = vmatpush3.bf16.msra.mxu1 %v5439_v61  ;;  %v5464_v60 = vld [vmem:[%s5724_s2 + $0x158] sm:$0xff]  }
0x10fe   : > { %4941 = vmatprep.subr.bf16.mxu0 %v5440_v63  ;;  %4963 = vmatprep.subr.bf16.mxu1 %v5441_v0  ;;  %v5465_v61 = vld [vmem:[%s5724_s2 + $0x1d8] sm:$0xff]  }
0x1101   : > { %4942 = vmatpush3.bf16.msra.mxu0 %v5442_v1  ;;  %4964 = vmatpush3.bf16.msra.mxu1 %v5443_v7 }
0x1102   : > { %4943 = vmatprep.subr.bf16.mxu0 %v5444_v8  ;;  %4965 = vmatprep.subr.bf16.mxu1 %v5445_v9 }
0x1105   : > { %4944 = vmatpush3.bf16.msra.mxu0 %v5446_v10  ;;  %4966 = vmatpush3.bf16.msra.mxu1 %v5447_v12 }
0x1106   : > { %4945 = vmatprep.subr.bf16.mxu0 %v5448_v13  ;;  %4967 = vmatprep.subr.bf16.mxu1 %v5449_v14  ;;  %v5466_v13 = vld [vmem:[%s5724_s2 + $0x118] sm:$0xff]  }
0x1107   : > { %v5467_v14 = vld [vmem:[%s5724_s2 + $0x198] sm:$0xff]  }
0x1109   : > { %4946 = vmatpush3.bf16.msra.mxu0 %v5450_v15  ;;  %4968 = vmatpush3.bf16.msra.mxu1 %v5451_v16 }
0x110a   : > { %4975 = vmatprep.subr.bf16.mxu0 %v5452_v19  ;;  %4997 = vmatprep.subr.bf16.mxu1 %v5453_v20  ;;  %v5468_v19 = vld [vmem:[%s5724_s2 + $0x160] sm:$0xff]  }
0x110b   : > { %v5469_v20 = vld [vmem:[%s5724_s2 + $0x1e0] sm:$0xff]  }
0x118f   : > { %v2587_v30 = vpop.f32.mrb[44].mxu0  ;;  %v2628_v31 = vpop.f32.mrb[52].mxu1 }
0x1190   : > { %v2588_v32 = vadd.f32 %v2587_v30, %v2153_v26  ;;  %v2629_v34 = vadd.f32 %v2628_v31, %v2161_v27  ;;  %v2589_v35 = vpop.f32.mrb[45].mxu0  ;;  %v2630_v22 = vpop.f32.mrb[53].mxu1  ;;  %v5470_v30 = vld [vmem:[%s5724_s2 + $0x120] sm:$0xff]  }
0x1191   : > { %v2590_v37 = vadd.f32 %v2589_v35, %v2157_v28  ;;  %v2631_v38 = vadd.f32 %v2630_v22, %v2165_v29  ;;  %v2591_v39 = vpop.f32.mrb[46].mxu0  ;;  %v2632_v40 = vpop.f32.mrb[54].mxu1  ;;  %v5471_v31 = vld [vmem:[%s5724_s2 + $0x1a0] sm:$0xff]   ;;  %v5473_v35 = vld [vmem:[%s5724_s2 + $0x1e8] sm:$0xff]  }
0x1192   : > { %v2881_v41 = vmax.f32 %v2588_v32, 0.0  ;;  %v2883_v42 = vmax.f32 %v2629_v34, 0.0  ;;  %v2592_v43 = vpop.f32.mrb[47].mxu0  ;;  %v2633_v44 = vpop.f32.mrb[55].mxu1  ;;  %v6186_v32 = vsub.s32 4, %v5788_v33  ;;  %v5472_v34 = vld [vmem:[%s5724_s2 + $0x168] sm:$0xff]   ;;  %v2177_v39 = vrot.slane %v6145_v24, %v2176_v23 }
0x1193   : > { %v2882_v45 = vmax.f32 %v2590_v37, 0.0  ;;  %v2884_v46 = vmax.f32 %v2631_v38, 0.0  ;;  %v5474_v22 = vld [vmem:[%s5724_s2 + $0x128] sm:$0xff]   ;;  %v5476_v40 = vld [vmem:[%s5724_s2 + $0x170] sm:$0xff]   ;;  %v2197_v43 = vrot.slane %v6137_v6, %v6148_v25  ;;  %v5480_v23 = vld [vmem:[%s5724_s2 + $0x178] sm:$0xff]  }
0x1194   : > { %v2897_v50 = vpack.c.bf16 %v2881_v41, %v2881_v41  ;;  %v2899_v51 = vpack.c.bf16 %v2883_v42, %v2883_v42  ;;  %v5475_v37 = vld [vmem:[%s5724_s2 + $0x1a8] sm:$0xff]   ;;  %v2169_v38 = vrot.slane %v6145_v24, %v6186_v32  ;;  %v5477_v41 = vld [vmem:[%s5724_s2 + $0x1f0] sm:$0xff]   ;;  %v2189_v42 = vrot.slane %v6137_v6, %v6019_v3  ;;  %v5481_v24 = vld [vmem:[%s5724_s2 + $0x1f8] sm:$0xff]  }
0x1195   : > { %v2898_v62 = vpack.c.bf16 %v2882_v45, %v2882_v45  ;;  %v2900_v47 = vpack.c.bf16 %v2884_v46, %v2884_v46  ;;  %v5478_v44 = vld [vmem:[%s5724_s2 + $0x130] sm:$0xff]  }
0x1196   : > { %v5479_v45 = vld [vmem:[%s5724_s2 + $0x1b0] sm:$0xff]  }
0x1197   : > { %3973 = vmatprep.mubr.bf16.mxu0 %v2898_v62  ;;  %4013 = vmatprep.mubr.bf16.mxu1 %v2900_v47 }
0x1198   : > { %3974 = vmatmul.mubr.bf16.vlgmr.msra.gmra.mrb[60].mxu0 %v2897_v50  ;;  %4014 = vmatmul.mubr.bf16.vlgmr.msra.gmra.mrb[68].mxu1 %v2899_v51 }
0x1199   : > { %4976 = vmatpush3.bf16.msra.mxu0 %v5454_v48  ;;  %4998 = vmatpush3.bf16.msra.mxu1 %v5455_v49 }
0x119a   : > { %4977 = vmatprep.subr.bf16.mxu0 %v5456_v52  ;;  %4999 = vmatprep.subr.bf16.mxu1 %v5457_v53 }
0x119d   : > { %4978 = vmatpush3.bf16.msra.mxu0 %v5458_v11  ;;  %5000 = vmatpush3.bf16.msra.mxu1 %v5459_v54  ;;  %v5482_v11 = vld [vmem:[%s5724_s2 + $0x138] sm:$0xff]  }
0x119e   : > { %4979 = vmatprep.subr.bf16.mxu0 %v5460_v18  ;;  %5001 = vmatprep.subr.bf16.mxu1 %v5461_v36  ;;  %v5483_v54 = vld [vmem:[%s5724_s2 + $0x1b8] sm:$0xff]  }
0x119f   : > { %v2669_v63 = vpop.f32.mrb[48].mxu0  ;;  %v2710_v0 = vpop.f32.mrb[56].mxu1 }
0x11a0   : > { %v2671_v1 = vpop.f32.mrb[49].mxu0  ;;  %v2712_v7 = vpop.f32.mrb[57].mxu1  ;;  %v2670_v46 = vadd.f32 %v2669_v63, %v2169_v38  ;;  %v2711_v62 = vadd.f32 %v2710_v0, %v2177_v39  ;;  %v5486_v63 = vld [vmem:[%s5724_s2 + $0x200] sm:$0xff]   ;;  %v5498_v39 = vld [vmem:[%s5724_s2 + $0x218] sm:$0xff]  }
0x11a1   : > { %v2672_v8 = vadd.f32 %v2671_v1, %v2173_v56  ;;  %v2713_v9 = vadd.f32 %v2712_v7, %v2181_v57  ;;  %v2673_v10 = vpop.f32.mrb[50].mxu0  ;;  %v2714_v12 = vpop.f32.mrb[58].mxu1  ;;  %4980 = vmatpush3.bf16.msra.mxu0 %v5462_v58  ;;  %5002 = vmatpush3.bf16.msra.mxu1 %v5463_v59  ;;  %v5484_v58 = vld [vmem:[%s5724_s2 + $0x240] sm:$0xff]  }
0x11a2   : > { %v2674_v15 = vpop.f32.mrb[51].mxu0  ;;  %v2715_v16 = vpop.f32.mrb[59].mxu1  ;;  %4981 = vmatprep.subr.bf16.mxu0 %v5464_v60  ;;  %5003 = vmatprep.subr.bf16.mxu1 %v5465_v61  ;;  %v2885_v18 = vmax.f32 %v2670_v46, 0.0  ;;  %v2887_v36 = vmax.f32 %v2711_v62, 0.0  ;;  %v5485_v59 = vld [vmem:[%s5724_s2 + $0x2c0] sm:$0xff]   ;;  %v5489_v10 = vld [vmem:[%s5724_s2 + $0x2c8] sm:$0xff]  }
0x11a3   : > { %v2886_v26 = vmax.f32 %v2672_v8, 0.0  ;;  %v2888_v27 = vmax.f32 %v2713_v9, 0.0  ;;  %v5487_v7 = vld [vmem:[%s5724_s2 + $0x280] sm:$0xff]   ;;  %v5488_v9 = vld [vmem:[%s5724_s2 + $0x248] sm:$0xff]   ;;  %v5492_v15 = vld [vmem:[%s5724_s2 + $0x250] sm:$0xff]  }
0x11a4   : > { %v2901_v0 = vpack.c.bf16 %v2885_v18, %v2885_v18  ;;  %v2903_v1 = vpack.c.bf16 %v2887_v36, %v2887_v36  ;;  %v5493_v16 = vld [vmem:[%s5724_s2 + $0x2d0] sm:$0xff]   ;;  %v5504_v46 = vld [vmem:[%s5724_s2 + $0x268] sm:$0xff]   ;;  %v5513_v36 = vld [vmem:[%s5724_s2 + $0x2f8] sm:$0xff]  }
0x11a5   : > { %v2902_v28 = vpack.c.bf16 %v2886_v26, %v2886_v26  ;;  %v2904_v29 = vpack.c.bf16 %v2888_v27, %v2888_v27  ;;  %4982 = vmatpush3.bf16.msra.mxu0 %v5466_v13  ;;  %5004 = vmatpush3.bf16.msra.mxu1 %v5467_v14  ;;  %v5490_v13 = vld [vmem:[%s5724_s2 + $0x208] sm:$0xff]   ;;  %v5495_v26 = vld [vmem:[%s5724_s2 + $0x290] sm:$0xff]   ;;  %v5496_v27 = vld [vmem:[%s5724_s2 + $0x258] sm:$0xff]  }
0x11a6   : > { %4983 = vmatprep.subr.bf16.mxu0 %v5468_v19  ;;  %5005 = vmatprep.subr.bf16.mxu1 %v5469_v20  ;;  %v5491_v14 = vld [vmem:[%s5724_s2 + $0x288] sm:$0xff]   ;;  %v2201_v19 = vrot.slane %v6137_v6, %v6186_v32  ;;  %v5494_v20 = vld [vmem:[%s5724_s2 + $0x210] sm:$0xff]  }
0x11a7   : > { %4053 = vmatprep.mubr.bf16.mxu0 %v2902_v28  ;;  %4093 = vmatprep.mubr.bf16.mxu1 %v2904_v29  ;;  %v5505_v62 = vld [vmem:[%s5724_s2 + $0x2e8] sm:$0xff]  }
0x11a9   : > { %4984 = vmatpush3.bf16.msra.mxu0 %v5470_v30  ;;  %5006 = vmatpush3.bf16.msra.mxu1 %v5471_v31  ;;  %v5497_v30 = vld [vmem:[%s5724_s2 + $0x2d8] sm:$0xff]  }
0x11aa   : > { %4985 = vmatprep.subr.bf16.mxu0 %v5472_v34  ;;  %5007 = vmatprep.subr.bf16.mxu1 %v5473_v35 }
0x11ad   : > { %4986 = vmatpush3.bf16.msra.mxu0 %v5474_v22  ;;  %5008 = vmatpush3.bf16.msra.mxu1 %v5475_v37 }
0x11ae   : > { %4987 = vmatprep.subr.bf16.mxu0 %v5476_v40  ;;  %5009 = vmatprep.subr.bf16.mxu1 %v5477_v41 }
0x11af   : > { %v6207_v47 = vpop.f32.mrb[52].mxu0  ;;  %v6209_v48 = vpop.f32.mrb[60].mxu1 }
0x11b0   : > { %v2753_v49 = vpop.f32.mrb[53].mxu0  ;;  %v2794_v3 = vpop.f32.mrb[61].mxu1 }
0x11b1   : > { %v2754_v50 = vadd.f32 %v2753_v49, %v2189_v42  ;;  %v2795_v51 = vadd.f32 %v2794_v3, %v2197_v43  ;;  %v2755_v52 = vpop.f32.mrb[54].mxu0  ;;  %v2796_v53 = vpop.f32.mrb[62].mxu1  ;;  %4988 = vmatpush3.bf16.msra.mxu0 %v5478_v44  ;;  %5010 = vmatpush3.bf16.msra.mxu1 %v5479_v45  ;;  %v5499_v42 = vld [vmem:[%s5724_s2 + $0x298] sm:$0xff]   ;;  %v5500_v43 = vld [vmem:[%s5724_s2 + $0x260] sm:$0xff]   ;;  %v5507_v49 = vld [vmem:[%s5724_s2 + $0x2a8] sm:$0xff]  }
0x11b2   : > { %v2756_v56 = vpop.f32.mrb[55].mxu0  ;;  %v2797_v57 = vpop.f32.mrb[63].mxu1  ;;  %4989 = vmatprep.subr.bf16.mxu0 %v5480_v23  ;;  %5011 = vmatprep.subr.bf16.mxu1 %v5481_v24  ;;  %v5502_v44 = vld [vmem:[%s5724_s2 + $0x220] sm:$0xff]   ;;  %v5506_v23 = vld [vmem:[%s5724_s2 + $0x228] sm:$0xff]   ;;  %v2185_v24 = vrot.slane %v6137_v6, %v5982_v5  ;;  %v5508_v3 = vld [vmem:[%s5724_s2 + $0x270] sm:$0xff]   ;;  %v2205_v52 = vrot.slane %v6137_v6, %v6165_v2  ;;  %v2213_v53 = vrot.slane %v6137_v6, %v2180_v55 }
0x11b3   : > { %v2890_v60 = vmax.f32 %v2754_v50, 0.0  ;;  %v2892_v61 = vmax.f32 %v2795_v51, 0.0  ;;  %v5503_v45 = vld [vmem:[%s5724_s2 + $0x2a0] sm:$0xff]   ;;  %v2193_v50 = vrot.slane %v6137_v6, %v6022_v4  ;;  %v5509_v51 = vld [vmem:[%s5724_s2 + $0x2f0] sm:$0xff]   ;;  %v5512_v4 = vld [vmem:[%s5724_s2 + $0x278] sm:$0xff]  }
0x11b4   : > { %v5510_v5 = vld [vmem:[%s5724_s2 + $0x230] sm:$0xff]   ;;  %v5514_v6 = vld [vmem:[%s5724_s2 + $0x238] sm:$0xff]   ;;  %v5516_v57 = vld [vmem:[%s5724_s2 + $0x340] sm:$0xff]  }
0x11b5   : > { %4990 = vmatpush3.bf16.msra.mxu0 %v5482_v11  ;;  %5012 = vmatpush3.bf16.msra.mxu1 %v5483_v54  ;;  %v2906_v8 = vpack.c.bf16 %v2890_v60, %v2890_v60  ;;  %v2908_v12 = vpack.c.bf16 %v2892_v61, %v2892_v61  ;;  %v2752_v11 = vadd.f32 %v6207_v47, %v2185_v24  ;;  %v5511_v54 = vld [vmem:[%s5724_s2 + $0x2b0] sm:$0xff]   ;;  %v5515_v47 = vld [vmem:[%s5724_s2 + $0x2b8] sm:$0xff]   ;;  %v5518_v61 = vld [vmem:[%s5724_s2 + $0x300] sm:$0xff]  }
0x11b6   : > { %5019 = vmatprep.subr.bf16.mxu0 %v5484_v58  ;;  %5041 = vmatprep.subr.bf16.mxu1 %v5485_v59  ;;  %v2793_v18 = vadd.f32 %v6209_v48, %v2193_v50  ;;  %v5517_v59 = vld [vmem:[%s5724_s2 + $0x3c0] sm:$0xff]  }
0x11b7   : > { %v2889_v55 = vmax.f32 %v2752_v11, 0.0 }
0x11b8   : > { %4054 = vmatmul.mubr.bf16.vlgmr.msra.gmra.mrb[64].mxu0 %v2901_v0  ;;  %4094 = vmatmul.mubr.bf16.vlgmr.msra.gmra.mrb[72].mxu1 %v2903_v1  ;;  %v2891_v58 = vmax.f32 %v2793_v18, 0.0  ;;  %v5519_v0 = vld [vmem:[%s5724_s2 + $0x380] sm:$0xff]  }
0x11b9   : > { %5020 = vmatpush3.bf16.msra.mxu0 %v5486_v63  ;;  %4133 = vmatprep.mubr.bf16.mxu0 %v2906_v8  ;;  %v2905_v63 = vpack.c.bf16 %v2889_v55, %v2889_v55 }
0x11ba   : > { %5042 = vmatpush3.bf16.msra.mxu1 %v5487_v7  ;;  %4173 = vmatprep.mubr.bf16.mxu1 %v2908_v12  ;;  %v2907_v1 = vpack.c.bf16 %v2891_v58, %v2891_v58  ;;  %v5520_v7 = vld [vmem:[%s5724_s2 + $0x348] sm:$0xff]  }
0x11bb   : > { %5021 = vmatprep.subr.bf16.mxu0 %v5488_v9  ;;  %5043 = vmatprep.subr.bf16.mxu1 %v5489_v10  ;;  %v5521_v9 = vld [vmem:[%s5724_s2 + $0x3c8] sm:$0xff]  }
0x11bc   : > { %v5522_v12 = vld [vmem:[%s5724_s2 + $0x308] sm:$0xff]  }
0x11bd   : > { %5022 = vmatpush3.bf16.msra.mxu0 %v5490_v13  ;;  %v5523_v13 = vld [vmem:[%s5724_s2 + $0x388] sm:$0xff]  }
0x11be   : > { %5044 = vmatpush3.bf16.msra.mxu1 %v5491_v14  ;;  %5023 = vmatprep.subr.bf16.mxu0 %v5492_v15  ;;  %v5524_v14 = vld [vmem:[%s5724_s2 + $0x350] sm:$0xff]  }
0x11bf   : > { %v2833_v28 = vpop.f32.mrb[56].mxu0  ;;  %v2874_v29 = vpop.f32.mrb[64].mxu1  ;;  %5045 = vmatprep.subr.bf16.mxu1 %v5493_v16  ;;  %v5525_v15 = vld [vmem:[%s5724_s2 + $0x3d0] sm:$0xff]  }
0x11c0   : > { %v6229_v31 = vadd.f32 %v2833_v28, %v2201_v19  ;;  %v6232_v34 = vadd.f32 %v2874_v29, %v6142_v21  ;;  %v2835_v35 = vpop.f32.mrb[57].mxu0  ;;  %v2876_v22 = vpop.f32.mrb[65].mxu1  ;;  %v5501_v21 = vld [vmem:[%s5724_s2 + $0x2e0] sm:$0xff]   ;;  %v5526_v16 = vld [vmem:[%s5724_s2 + $0x310] sm:$0xff]   ;;  %v5531_v28 = vld [vmem:[%s5724_s2 + $0x398] sm:$0xff]  }
0x11c1   : > { %v2837_v37 = vpop.f32.mrb[58].mxu0  ;;  %v2878_v38 = vpop.f32.mrb[66].mxu1  ;;  %5024 = vmatpush3.bf16.msra.mxu0 %v5494_v20  ;;  %v2836_v56 = vadd.f32 %v2835_v35, %v2205_v52  ;;  %v2877_v33 = vadd.f32 %v2876_v22, %v2213_v53  ;;  %v5527_v19 = vld [vmem:[%s5724_s2 + $0x390] sm:$0xff]   ;;  %v5528_v20 = vld [vmem:[%s5724_s2 + $0x358] sm:$0xff]   ;;  %v5532_v29 = vld [vmem:[%s5724_s2 + $0x360] sm:$0xff]  }
0x11c2   : > { %5046 = vmatpush3.bf16.msra.mxu1 %v5495_v26  ;;  %v2838_v40 = vpop.f32.mrb[59].mxu0  ;;  %v2879_v41 = vpop.f32.mrb[67].mxu1  ;;  %5025 = vmatprep.subr.bf16.mxu0 %v5496_v27  ;;  %v5529_v26 = vld [vmem:[%s5724_s2 + $0x3d8] sm:$0xff]   ;;  %v5534_v35 = vld [vmem:[%s5724_s2 + $0x320] sm:$0xff]   ;;  %v5536_v37 = vld [vmem:[%s5724_s2 + $0x368] sm:$0xff]   ;;  %v2895_v24 = vmax.f32 %v6232_v34, 0.0 }
0x11c3   : > { %5047 = vmatprep.subr.bf16.mxu1 %v5497_v30  ;;  %v2894_v60 = vmax.f32 %v2836_v56, 0.0  ;;  %v2896_v48 = vmax.f32 %v2877_v33, 0.0  ;;  %v5530_v27 = vld [vmem:[%s5724_s2 + $0x318] sm:$0xff]   ;;  %v5533_v30 = vld [vmem:[%s5724_s2 + $0x3e0] sm:$0xff]   ;;  %v5537_v38 = vld [vmem:[%s5724_s2 + $0x3e8] sm:$0xff]  }
0x11c4   : > { %v5535_v22 = vld [vmem:[%s5724_s2 + $0x3a0] sm:$0xff]   ;;  %v5539_v40 = vld [vmem:[%s5724_s2 + $0x3a8] sm:$0xff]   ;;  %v5540_v41 = vld [vmem:[%s5724_s2 + $0x370] sm:$0xff]  }
0x11c5   : > { %5026 = vmatpush3.bf16.msra.mxu0 %v5498_v39  ;;  %v2910_v8 = vpack.c.bf16 %v2894_v60, %v2894_v60  ;;  %v2912_v10 = vpack.c.bf16 %v2896_v48, %v2896_v48  ;;  %v5538_v39 = vld [vmem:[%s5724_s2 + $0x328] sm:$0xff]   ;;  %v6298_v52 = vld [vmem:[%s5729_s26] sm:$0xff] }
0x11c6   : > { %5048 = vmatpush3.bf16.msra.mxu1 %v5499_v42  ;;  %5027 = vmatprep.subr.bf16.mxu0 %v5500_v43  ;;  %v5541_v42 = vld [vmem:[%s5724_s2 + $0x3f0] sm:$0xff]   ;;  %v3172_v53 = vrot.slane %v6298_v52, %v6148_v25 }
0x11c7   : > { %5049 = vmatprep.subr.bf16.mxu1 %v5501_v21  ;;  %v5542_v43 = vld [vmem:[%s5724_s2 + $0x330] sm:$0xff]  }
0x11c8   : > { %v5543_v21 = vld [vmem:[%s5724_s2 + $0x3b0] sm:$0xff]  }
0x11c9   : > { %5028 = vmatpush3.bf16.msra.mxu0 %v5502_v44  ;;  %v5544_v44 = vld [vmem:[%s5724_s2 + $0x378] sm:$0xff]  }
0x11ca   : > { %5050 = vmatpush3.bf16.msra.mxu1 %v5503_v45  ;;  %5029 = vmatprep.subr.bf16.mxu0 %v5504_v46  ;;  %v5545_v45 = vld [vmem:[%s5724_s2 + $0x3f8] sm:$0xff]  }
0x11cb   : > { %5051 = vmatprep.subr.bf16.mxu1 %v5505_v62  ;;  %v5546_v46 = vld [vmem:[%s5724_s2 + $0x338] sm:$0xff]   ;;  %v2893_v62 = vmax.f32 %v6229_v31, 0.0 }
0x11cd   : > { %5030 = vmatpush3.bf16.msra.mxu0 %v5506_v23  ;;  %v5547_v23 = vld [vmem:[%s5724_s2 + $0x3b8] sm:$0xff]  }
0x11ce   : > { %5052 = vmatpush3.bf16.msra.mxu1 %v5507_v49  ;;  %5031 = vmatprep.subr.bf16.mxu0 %v5508_v3  ;;  %v2909_v49 = vpack.c.bf16 %v2893_v62, %v2893_v62  ;;  %v2911_v3 = vpack.c.bf16 %v2895_v24, %v2895_v24 }
0x11cf   : > { %5053 = vmatprep.subr.bf16.mxu1 %v5509_v51 }
0x11d1   : > { %5032 = vmatpush3.bf16.msra.mxu0 %v5510_v5 }
0x11d2   : > { %5054 = vmatpush3.bf16.msra.mxu1 %v5511_v54  ;;  %5033 = vmatprep.subr.bf16.mxu0 %v5512_v4 }
0x11d3   : > { %5055 = vmatprep.subr.bf16.mxu1 %v5513_v36 }
0x11d5   : > { %5034 = vmatpush3.bf16.msra.mxu0 %v5514_v6 }
0x11d6   : > { %5056 = vmatpush3.bf16.msra.mxu1 %v5515_v47  ;;  %5063 = vmatprep.subr.bf16.mxu0 %v5516_v57 }
0x11d7   : > { %5085 = vmatprep.subr.bf16.mxu1 %v5517_v59 }
0x11d8   : > { %4134 = vmatmul.mubr.bf16.vlgmr.msra.gmra.mrb[68].mxu0 %v2905_v63 }
0x11d9   : > { %4174 = vmatmul.mubr.bf16.vlgmr.msra.gmra.mrb[76].mxu1 %v2907_v1  ;;  %5064 = vmatpush3.bf16.msra.mxu0 %v5518_v61 }
0x11da   : > { %4213 = vmatprep.mubr.bf16.mxu0 %v2910_v8  ;;  %5086 = vmatpush3.bf16.msra.mxu1 %v5519_v0 }
0x11db   : > { %4253 = vmatprep.mubr.bf16.mxu1 %v2912_v10  ;;  %5065 = vmatprep.subr.bf16.mxu0 %v5520_v7 }
0x11dc   : > { %5087 = vmatprep.subr.bf16.mxu1 %v5521_v9 }
0x11dd   : > { %5066 = vmatpush3.bf16.msra.mxu0 %v5522_v12 }
0x11de   : > { %5088 = vmatpush3.bf16.msra.mxu1 %v5523_v13  ;;  %5067 = vmatprep.subr.bf16.mxu0 %v5524_v14 }
0x11df   : > { %5089 = vmatprep.subr.bf16.mxu1 %v5525_v15 }
0x11e1   : > { %5068 = vmatpush3.bf16.msra.mxu0 %v5526_v16 }
0x11e2   : > { %5090 = vmatpush3.bf16.msra.mxu1 %v5527_v19  ;;  %5069 = vmatprep.subr.bf16.mxu0 %v5528_v20 }
0x11e3   : > { %5091 = vmatprep.subr.bf16.mxu1 %v5529_v26 }
0x11e5   : > { %5070 = vmatpush3.bf16.msra.mxu0 %v5530_v27 }
0x11e6   : > { %5092 = vmatpush3.bf16.msra.mxu1 %v5531_v28  ;;  %5071 = vmatprep.subr.bf16.mxu0 %v5532_v29 }
0x11e7   : > { %5093 = vmatprep.subr.bf16.mxu1 %v5533_v30 }
0x11e9   : > { %5072 = vmatpush3.bf16.msra.mxu0 %v5534_v35 }
0x11ea   : > { %5094 = vmatpush3.bf16.msra.mxu1 %v5535_v22  ;;  %5073 = vmatprep.subr.bf16.mxu0 %v5536_v37 }
0x11eb   : > { %5095 = vmatprep.subr.bf16.mxu1 %v5537_v38 }
0x11ed   : > { %5074 = vmatpush3.bf16.msra.mxu0 %v5538_v39 }
0x11ee   : > { %5096 = vmatpush3.bf16.msra.mxu1 %v5539_v40  ;;  %5075 = vmatprep.subr.bf16.mxu0 %v5540_v41 }
0x11ef   : > { %5097 = vmatprep.subr.bf16.mxu1 %v5541_v42 }
0x11f1   : > { %5076 = vmatpush3.bf16.msra.mxu0 %v5542_v43 }
0x11f2   : > { %5098 = vmatpush3.bf16.msra.mxu1 %v5543_v21  ;;  %5077 = vmatprep.subr.bf16.mxu0 %v5544_v44 }
0x11f3   : > { %5099 = vmatprep.subr.bf16.mxu1 %v5545_v45 }
0x11f5   : > { %5078 = vmatpush3.bf16.msra.mxu0 %v5546_v46 }
0x11f6   : > { %5100 = vmatpush3.bf16.msra.mxu1 %v5547_v23 }
0x11f8   : > { %4214 = vmatmul.mubr.bf16.vlgmr.msra.gmra.mrb[72].mxu0 %v2909_v49 }
0x11f9   : > { %4254 = vmatmul.mubr.bf16.vlgmr.msra.gmra.mrb[80].mxu1 %v2911_v3  ;;  %v4278_v3 = vrot.slane %v6298_v52, %v6186_v32 }
0x126b   : > { %v4947_v50 = vpop.f32.mrb[60].mxu0  ;;  %v4969_v51 = vpop.f32.mrb[68].mxu1 }
0x126c   : > { %v4948_v31 = vpop.f32.mrb[61].mxu0  ;;  %v4970_v5 = vpop.f32.mrb[69].mxu1 }
0x126d   : > { %v4949_v11 = vadd.f32 %v4948_v31, %v4947_v50  ;;  %v4971_v54 = vadd.f32 %v4970_v5, %v4969_v51  ;;  %v4950_v4 = vpop.f32.mrb[62].mxu0  ;;  %v4972_v34 = vpop.f32.mrb[70].mxu1 }
0x126e   : > { %v4951_v18 = vpop.f32.mrb[63].mxu0  ;;  %v4973_v36 = vpop.f32.mrb[71].mxu1 }
0x126f   : > { %v3976_v56 = vadd.f32 %v4949_v11, %v3172_v53 }
0x1271   : > { %v4016_v33 = vadd.f32 %v4971_v54, %v3976_v56 }
0x128b   : > { %v4991_v6 = vpop.f32.mrb[64].mxu0  ;;  %v5013_v55 = vpop.f32.mrb[72].mxu1 }
0x128c   : > { %v4992_v47 = vpop.f32.mrb[65].mxu0  ;;  %v5014_v57 = vpop.f32.mrb[73].mxu1 }
0x128d   : > { %v4993_v58 = vadd.f32 %v4992_v47, %v4991_v6  ;;  %v5015_v59 = vadd.f32 %v5014_v57, %v5013_v55  ;;  %v4994_v60 = vpop.f32.mrb[66].mxu0  ;;  %v5016_v48 = vpop.f32.mrb[74].mxu1 }
0x128e   : > { %v4995_v61 = vpop.f32.mrb[67].mxu0  ;;  %v5017_v25 = vpop.f32.mrb[75].mxu1 }
0x128f   : > { %v4056_v63 = vadd.f32 %v4993_v58, %v4016_v33 }
0x1291   : > { %v4096_v0 = vadd.f32 %v5015_v59, %v4056_v63 }
0x12ab   : > { %v5035_v1 = vpop.f32.mrb[68].mxu0 }
0x12ac   : > { %v5057_v7 = vpop.f32.mrb[76].mxu1  ;;  %v5036_v8 = vpop.f32.mrb[69].mxu0 }
0x12ad   : > { %v5037_v9 = vadd.f32 %v5036_v8, %v5035_v1  ;;  %v5058_v10 = vpop.f32.mrb[77].mxu1  ;;  %v5038_v12 = vpop.f32.mrb[70].mxu0 }
0x12ae   : > { %v5059_v13 = vadd.f32 %v5058_v10, %v5057_v7  ;;  %v5060_v14 = vpop.f32.mrb[78].mxu1  ;;  %v5039_v15 = vpop.f32.mrb[71].mxu0 }
0x12af   : > { %v4136_v16 = vadd.f32 %v5037_v9, %v4096_v0  ;;  %v5061_v19 = vpop.f32.mrb[79].mxu1 }
0x12b1   : > { %v4176_v20 = vadd.f32 %v5059_v13, %v4136_v16 }
0x12cb   : > { %v5079_v26 = vpop.f32.mrb[72].mxu0 }
0x12cc   : > { %v5101_v27 = vpop.f32.mrb[80].mxu1  ;;  %v5080_v28 = vpop.f32.mrb[73].mxu0 }
0x12cd   : > { %v5081_v29 = vadd.f32 %v5080_v28, %v5079_v26  ;;  %v5102_v30 = vpop.f32.mrb[81].mxu1  ;;  %v5082_v35 = vpop.f32.mrb[74].mxu0 }
0x12ce   : > { %v5103_v22 = vadd.f32 %v5102_v30, %v5101_v27  ;;  %v5104_v37 = vpop.f32.mrb[82].mxu1  ;;  %v5083_v38 = vpop.f32.mrb[75].mxu0 }
0x12cf   : > { %v4216_v39 = vadd.f32 %v5081_v29, %v4176_v20  ;;  %v5105_v40 = vpop.f32.mrb[83].mxu1 }
0x12d1   : > { %v4256_v41 = vadd.f32 %v5103_v22, %v4216_v39 }
0x12d3   : > { %v4261_v42 = vadd.f32 %v4256_v41, %v6033_v17  ;;  %v4283_v17 = vrot.slane %v6298_v52, %v6165_v2 }
0x12d5   : > { %v4262_v43 = vsel %vm501_vm2, %v4261_v42, 0.0 }
0x12d6   : > { %4263 = vadd.xlane.f32.xlu0 %v4262_v43 }
0x1363   : > { %v4264_v21 = vpop.xlane.xlu0 %4263 }
0x1364   : > { %v4265_v44 = vmul.f32 0.015625, %v4264_v21 }
0x1366   : > { %v4266_v45 = vsub.f32 %v4261_v42, %v4265_v44 }
0x1368   : > { %v4267_v46 = vmul.f32 %v4266_v45, %v4266_v45 }
0x136a   : > { %v4268_v62 = vsel %vm501_vm2, %v4267_v46, 0.0 }
0x136b   : > { %4269 = vadd.xlane.f32.xlu1 %v4268_v62 }
0x13f8   : > { %v4270_v23 = vpop.xlane.xlu1 %4269 }
0x13f9   : > { %v4271_v24 = vmul.f32 0.015625, %v4270_v23 }
0x13fb   : > { %v4272_v49 = vadd.f32 1e-05, %v4271_v24 }
0x13fd   : > { %5566 = vrsqrt.f32 %v4272_v49 }
0x1407   : > { %v5567_v50 = vpop.eup %5566 }
0x1408   : > { %v4274_v51 = vmul.f32 %v5567_v50, %v4266_v45  ;;  %4289 = sbr.rel (%p4840_p8) target bundleno = 5135 (0x140f), region = 60 }
0x140a   : > { %v4279_v53 = vmul.f32 %v4278_v3, %v4274_v51 }
0x140c   : > { %v4284_v31 = vadd.f32 %v4283_v17, %v4279_v53 }
0x140e   : > { %4285 = vst.msk [vmem:[#allocation2] sm:$0xff] %vm501_vm2, %v4284_v31  ;;  %4290 = vst.msk [vmem:[%s5734_s15] sm:$0xff] (!%p4840_p8), %vm501_vm2, %v4284_v31 }
0x140f PF: > { %s18_s9 = sadd.s32 1, %s5608_s9   ;;  %s6347_s28 = sld [smem:[#allocation3_spill]] }
0x1410   : > { %p15_p9 = scmp.ge.s32.totalorder %s18_s9, 6   ;;  %s6348_s1 = sld [smem:[#allocation4_spill]] }
0x1411   : > { %s6349_s30 = sld [smem:[#allocation5_spill]]  ;;  %s6350_s27 = smov %s5600_s29 }
0x1412   :  { %17 = sbr.rel (!%p15_p9) target bundleno = 4 (0x4), region = 125 }
0x1416   : > { %s6351_s29 = smov %s6348_s1 }

</bundles_post_ra>
